<compile_context>
chip_gen: v5e
topology: v5e:2x2
jax: 0.10.0
libtpu: 0.0.40
codegen_flags: <defaults>
</compile_context>

<pallas_src>
import functools
import math

import jax
import jax.numpy as jnp
from jax.experimental import pallas as pl
from jax.experimental.pallas import tpu as pltpu

HIDDEN = 64          # nn.LSTM hidden_size
H2 = 2 * HIDDEN      # duplicated-state width (exactly one 128-lane tile)
H4 = 4 * HIDDEN      # gate width


def lstm_fc_kernel(x_ref, wih_ref, whh2_ref, b_ref, wfc2_ref, bfc_ref,
                   out_ref, h2_ref, c2_ref, *, t_tile, b_tile):
    """Grid = (batch_chunks, time_chunks).

    x_ref:    (t_tile * b_tile, F)  rows ordered [t, b] for this chunk
    wih_ref:  (F, 4H)   input->gate weights, gate column order [i, g, f, o],
                        g columns pre-scaled by 2 (tanh-via-sigmoid trick)
    whh2_ref: (2H, 4H)  hidden->gate weights (same reorder/scale), rows
                        [H, 2H) are zero
    b_ref:    (1, 4H)   b_ih + b_hh (reordered, g entries pre-scaled by 2)
    wfc2_ref: (2H, F)   fc weights, rows [H, 2H) are zero
    bfc_ref:  (1, F)
    out_ref:  (b_tile, F)
    h2_ref / c2_ref: (b_tile, 2H) VMEM scratch; lanes [0, H) hold the true
        hidden / cell state, lanes [H, 2H) hold bounded don't-care values
        that only ever multiply zero weight rows.
    """
    tc = pl.program_id(1)

    @pl.when(tc == 0)
    def _init():
        h2_ref[...] = jnp.zeros_like(h2_ref)
        c2_ref[...] = jnp.zeros_like(c2_ref)

    # ---- hoisted input projection: one matmul for the whole time chunk ----
    # (t_tile*b_tile, F) @ (F, 4H) + bias  -> per-step gate slabs, computed
    # off the serial critical path; bias broadcast happens once per chunk.
    gates_x = (jnp.dot(x_ref[...], wih_ref[...],
                       preferred_element_type=jnp.float32)
               + b_ref[...])                                   # (t_tile*b_tile, 4H)

    whh2 = whh2_ref[...]                                       # (2H, 4H)
    # Within the [i | g] half, lanes >= H hold the cell (g) gate.
    is_g = jax.lax.broadcasted_iota(jnp.int32, (b_tile, H2), 1) >= HIDDEN

    h2 = h2_ref[...]
    c2 = c2_ref[...]

    # Fully unrolled recurrence over the chunk (static indices everywhere).
    for t in range(t_tile):
        gx = gates_x[t * b_tile:(t + 1) * b_tile, :]           # (b_tile, 4H)
        pre = gx + jnp.dot(h2, whh2, preferred_element_type=jnp.float32)
        # Single fused EUP pass over all 4H lanes.  The g columns carry
        # 2*pre_g, so sigmoid(2*pre_g) can be mapped to tanh(pre_g) below.
        gates = jax.nn.sigmoid(pre)                            # (b_tile, 4H)
        ig = gates[:, :H2]           # [sig(pre_i) | sig(2*pre_g)]  lane-aligned
        fo = gates[:, H2:]           # [sig(pre_f) | sig(pre_o)]    lane-aligned
        ig = jnp.where(is_g, 2.0 * ig - 1.0, ig)               # [i | tanh(g)]
        ig_prod = ig * pltpu.roll(ig, shift=HIDDEN, axis=1)    # lanes[:H] = i*g
        c2 = fo * c2 + ig_prod                                 # lanes[:H] = f*c + i*g
        h2 = pltpu.roll(fo, shift=HIDDEN, axis=1) * jnp.tanh(c2)  # lanes[:H] = o*tanh(c)

    h2_ref[...] = h2
    c2_ref[...] = c2

    @pl.when(tc == pl.num_programs(1) - 1)
    def _finalize():
        # fc(out[:, -1, :]); zero rows of wfc2 cancel the duplicate lanes of h2.
        out_ref[...] = (jnp.dot(h2, wfc2_ref[...],
                                preferred_element_type=jnp.float32)
                        + bfc_ref[...])


def lstm_model_forward(x, kernel_params, *, b_tile=8, t_tile=8):
    """x: (B, T, F) float32, batch-first like PyTorch.  Returns (B, F)."""
    B, T, F = x.shape
    wih, whh2, b, wfc2, bfc = kernel_params

    # Robustness: zero-pad the batch to a multiple of b_tile (zero rows run
    # through the recurrence harmlessly and are sliced off), and shrink
    # t_tile to a divisor of T.
    pad_b = (-B) % b_tile
    if pad_b:
        x = jnp.concatenate([x, jnp.zeros((pad_b, T, F), x.dtype)], axis=0)
    Bp = B + pad_b
    t_tile = math.gcd(T, t_tile)

    n_bc = Bp // b_tile
    n_tc = T // t_tile

    # Wrapper-side layout plumbing (one pass over x): group the batch into
    # b_tile chunks and make each time step a contiguous (b_tile, F) slab so
    # every kernel block is a 2-D, matmul-ready (t_tile*b_tile, F) slab.
    x2 = (x.reshape(n_bc, b_tile, T, F)
           .transpose(0, 2, 1, 3)
           .reshape(n_bc * T * b_tile, F))

    kernel = functools.partial(lstm_fc_kernel, t_tile=t_tile, b_tile=b_tile)

    weights_bytes = 4 * (F * H4 + H2 * H4 + H4 + H2 * F + F)
    cost = pl.CostEstimate(
        flops=2 * Bp * T * H4 * (F + H2) + 2 * Bp * H2 * F,
        transcendentals=6 * Bp * T * HIDDEN,
        bytes_accessed=4 * (Bp * T * F + Bp * F) + weights_bytes,
    )

    out = pl.pallas_call(
        kernel,
        out_shape=jax.ShapeDtypeStruct((Bp, F), jnp.float32),
        grid=(n_bc, n_tc),
        in_specs=[
            pl.BlockSpec((t_tile * b_tile, F), lambda bc, tc: (bc * n_tc + tc, 0)),
            pl.BlockSpec((F, H4), lambda bc, tc: (0, 0)),
            pl.BlockSpec((H2, H4), lambda bc, tc: (0, 0)),
            pl.BlockSpec((1, H4), lambda bc, tc: (0, 0)),
            pl.BlockSpec((H2, F), lambda bc, tc: (0, 0)),
            pl.BlockSpec((1, F), lambda bc, tc: (0, 0)),
        ],
        out_specs=pl.BlockSpec((b_tile, F), lambda bc, tc: (bc, 0)),
        scratch_shapes=[
            pltpu.VMEM((b_tile, H2), jnp.float32),   # h (duplicated lanes)
            pltpu.VMEM((b_tile, H2), jnp.float32),   # c (duplicated lanes)
        ],
        compiler_params=pltpu.CompilerParams(
            dimension_semantics=("parallel", "arbitrary"),
            vmem_limit_bytes=32 * 1024 * 1024,
        ),
        cost_estimate=cost,
    )(x2, wih, whh2, b, wfc2, bfc)

    return out[:B] if pad_b else out


def init_params(key, n_features):
    """PyTorch-shaped LSTM + Linear params (same layout as the state_dict)."""
    k = 1.0 / jnp.sqrt(HIDDEN)
    ks = jax.random.split(key, 6)
    w_ih = jax.random.uniform(ks[0], (H4, n_features), jnp.float32, -k, k)
    w_hh = jax.random.uniform(ks[1], (H4, HIDDEN), jnp.float32, -k, k)
    b_ih = jax.random.uniform(ks[2], (H4,), jnp.float32, -k, k)
    b_hh = jax.random.uniform(ks[3], (H4,), jnp.float32, -k, k)
    w_fc = jax.random.uniform(ks[4], (n_features, HIDDEN), jnp.float32, -k, k)
    b_fc = jax.random.uniform(ks[5], (n_features,), jnp.float32, -k, k)
    return w_ih, w_hh, b_ih, b_hh, w_fc, b_fc


def prep_params(torch_params):
    """Transpose / reorder ([i,f,g,o] -> [i,g,f,o]) / scale g by 2 / zero-pad."""
    w_ih, w_hh, b_ih, b_hh, w_fc, b_fc = torch_params

    def reorder_scale(m):
        # Gate blocks [i, f, g, o] -> [i, g, f, o] along axis 0.  The g block
        # is pre-scaled by 2 so the kernel can use tanh(x) = 2*sigmoid(2x) - 1
        # and run a single fused sigmoid over all gate lanes.
        i, f, g, o = jnp.split(m, 4, axis=0)
        return jnp.concatenate([i, 2.0 * g, f, o], axis=0)

    wih = reorder_scale(w_ih).T                                   # (F, 4H)
    whh = reorder_scale(w_hh).T                                   # (H, 4H)
    whh2 = jnp.concatenate([whh, jnp.zeros_like(whh)], axis=0)    # (2H, 4H)
    b = reorder_scale((b_ih + b_hh)[:, None]).T                   # (1, 4H)
    wfc = w_fc.T                                                  # (H, F)
    wfc2 = jnp.concatenate([wfc, jnp.zeros_like(wfc)], axis=0)    # (2H, F)
    bfc = b_fc[None, :]                                           # (1, F)
    return wih, whh2, b, wfc2, bfc


def reference_forward(x, torch_params):
    """Pure-JAX reference with PyTorch nn.LSTM + nn.Linear semantics."""
    w_ih, w_hh, b_ih, b_hh, w_fc, b_fc = torch_params
    B, T, F = x.shape
    h = jnp.zeros((B, HIDDEN), jnp.float32)
    c = jnp.zeros((B, HIDDEN), jnp.float32)
    for t in range(T):
        gates = x[:, t, :] @ w_ih.T + h @ w_hh.T + b_ih + b_hh
        i = jax.nn.sigmoid(gates[:, 0 * HIDDEN:1 * HIDDEN])
        f = jax.nn.sigmoid(gates[:, 1 * HIDDEN:2 * HIDDEN])
        g = jnp.tanh(gates[:, 2 * HIDDEN:3 * HIDDEN])
        o = jax.nn.sigmoid(gates[:, 3 * HIDDEN:4 * HIDDEN])
        c = f * c + i * g
        h = o * jnp.tanh(c)
    return h @ w_fc.T + b_fc


if __name__ == "__main__":
    B, T, F = 16, 16, 16     # batch, seq_len, n_features
    key = jax.random.PRNGKey(0)
    kx, kp = jax.random.split(key)
    x = jax.random.normal(kx, (B, T, F), jnp.float32)

    torch_params = init_params(kp, F)
    kernel_params = prep_params(torch_params)

    out = lstm_model_forward(x, kernel_params, b_tile=8, t_tile=8)
    out = jax.block_until_ready(out)

    ref = reference_forward(x, torch_params)
    assert out.shape == (B, F)
    assert jnp.allclose(out, ref, atol=1e-4, rtol=1e-4), "mismatch vs reference"
    print("KERNEL_OK")
</pallas_src>

<mosaic_0001>
module attributes {stable_mosaic.version = 11 : i64} {
  func.func @lstm_fc_kernel(%arg0: i32, %arg1: i32, %arg2: memref<64x16xf32, #tpu.memory_space<vmem>>, %arg3: memref<16x256xf32, #tpu.memory_space<vmem>>, %arg4: memref<128x256xf32, #tpu.memory_space<vmem>>, %arg5: memref<1x256xf32, #tpu.memory_space<vmem>>, %arg6: memref<128x16xf32, #tpu.memory_space<vmem>>, %arg7: memref<1x16xf32, #tpu.memory_space<vmem>>, %arg8: memref<8x16xf32, #tpu.memory_space<vmem>>, %arg9: memref<8x128xf32, #tpu.memory_space<vmem>>, %arg10: memref<8x128xf32, #tpu.memory_space<vmem>>) attributes {dimension_semantics = [#tpu.dimension_semantics<parallel>, #tpu.dimension_semantics<arbitrary>], iteration_bounds = array<i64: 2, 2>, scalar_prefetch = 0 : i64, scratch_operands = 2 : i64, tpu.core_type = #tpu.core_type<tc>, window_params = [{transform_indices = @transform_0, window_bounds = array<i64: 64, 16>}, {pipeline_mode = #tpu.pipeline_mode<synchronous>, transform_indices = @transform_1, window_bounds = array<i64: 16, 256>}, {pipeline_mode = #tpu.pipeline_mode<synchronous>, transform_indices = @transform_2, window_bounds = array<i64: 128, 256>}, {pipeline_mode = #tpu.pipeline_mode<synchronous>, transform_indices = @transform_3, window_bounds = array<i64: 1, 256>}, {pipeline_mode = #tpu.pipeline_mode<synchronous>, transform_indices = @transform_4, window_bounds = array<i64: 128, 16>}, {pipeline_mode = #tpu.pipeline_mode<synchronous>, transform_indices = @transform_5, window_bounds = array<i64: 1, 16>}, {transform_indices = @transform_6, window_bounds = array<i64: 8, 16>}]} {
    %c0_i32 = arith.constant 0 : i32
    %0 = arith.cmpi eq, %arg1, %c0_i32 : i32
    %1 = arith.extui %0 : i1 to i32
    %c0_i32_0 = arith.constant 0 : i32
    %2 = arith.cmpi ne, %1, %c0_i32_0 : i32
    scf.if %2 {
      %cst_65 = arith.constant 0.000000e+00 : f32
      %196 = vector.broadcast %cst_65 : f32 to vector<8x128xf32>
      %c0_66 = arith.constant 0 : index
      %c0_67 = arith.constant 0 : index
      %197 = vector.load %arg9[%c0_66, %c0_67] : memref<8x128xf32, #tpu.memory_space<vmem>>, vector<8x128xf32>
      tpu.vector_store %arg9[%c0_66, %c0_67], %196 {strides = array<i32>} : memref<8x128xf32, #tpu.memory_space<vmem>>, vector<8x128xf32>,
      %cst_68 = arith.constant 0.000000e+00 : f32
      %198 = vector.broadcast %cst_68 : f32 to vector<8x128xf32>
      %c0_69 = arith.constant 0 : index
      %c0_70 = arith.constant 0 : index
      %199 = vector.load %arg10[%c0_69, %c0_70] : memref<8x128xf32, #tpu.memory_space<vmem>>, vector<8x128xf32>
      tpu.vector_store %arg10[%c0_69, %c0_70], %198 {strides = array<i32>} : memref<8x128xf32, #tpu.memory_space<vmem>>, vector<8x128xf32>,
    } else {
    }
    %c0 = arith.constant 0 : index
    %c0_1 = arith.constant 0 : index
    %3 = vector.load %arg2[%c0, %c0_1] : memref<64x16xf32, #tpu.memory_space<vmem>>, vector<64x16xf32>
    %c0_2 = arith.constant 0 : index
    %c0_3 = arith.constant 0 : index
    %4 = vector.load %arg3[%c0_2, %c0_3] : memref<16x256xf32, #tpu.memory_space<vmem>>, vector<16x256xf32>
    %cst = arith.constant dense<0.000000e+00> : vector<64x256xf32>
    %5 = tpu.matmul %3, %4, %cst {dimension_numbers = #tpu.dot_dimension_numbers<[1], [0], [0], [1], [0, 0, 1, 1], [], []>} : vector<64x16xf32>, vector<16x256xf32>, vector<64x256xf32> -> vector<64x256xf32>
    %c0_4 = arith.constant 0 : index
    %c0_5 = arith.constant 0 : index
    %6 = vector.load %arg5[%c0_4, %c0_5] : memref<1x256xf32, #tpu.memory_space<vmem>>, vector<1x256xf32>
    %7 = vector.broadcast %6 : vector<1x256xf32> to vector<64x256xf32>
    %8 = arith.addf %5, %7 : vector<64x256xf32>
    %c0_6 = arith.constant 0 : index
    %c0_7 = arith.constant 0 : index
    %9 = vector.load %arg4[%c0_6, %c0_7] : memref<128x256xf32, #tpu.memory_space<vmem>>, vector<128x256xf32>
    %10 = tpu.iota {dimensions = array<i32: 1>} : vector<8x128xi32>
    %c64_i32 = arith.constant 64 : i32
    %11 = vector.broadcast %c64_i32 : i32 to vector<8x128xi32>
    %12 = arith.cmpi sge, %10, %11 : vector<8x128xi32>
    %c0_8 = arith.constant 0 : index
    %c0_9 = arith.constant 0 : index
    %13 = vector.load %arg9[%c0_8, %c0_9] : memref<8x128xf32, #tpu.memory_space<vmem>>, vector<8x128xf32>
    %c0_10 = arith.constant 0 : index
    %c0_11 = arith.constant 0 : index
    %14 = vector.load %arg10[%c0_10, %c0_11] : memref<8x128xf32, #tpu.memory_space<vmem>>, vector<8x128xf32>
    %15 = vector.extract_strided_slice %8 {offsets = [0, 0], sizes = [8, 256], strides = [1, 1]} : vector<64x256xf32> to vector<8x256xf32>
    %cst_12 = arith.constant dense<0.000000e+00> : vector<8x256xf32>
    %16 = tpu.matmul %13, %9, %cst_12 {dimension_numbers = #tpu.dot_dimension_numbers<[1], [0], [0], [1], [0, 0, 1, 1], [], []>} : vector<8x128xf32>, vector<128x256xf32>, vector<8x256xf32> -> vector<8x256xf32>
    %17 = arith.addf %15, %16 : vector<8x256xf32>
    %18 = arith.negf %17 : vector<8x256xf32>
    %19 = math.exp %18 : vector<8x256xf32>
    %cst_13 = arith.constant 1.000000e+00 : f32
    %20 = vector.broadcast %cst_13 : f32 to vector<8x256xf32>
    %21 = arith.addf %20, %19 : vector<8x256xf32>
    %22 = arith.divf %20, %21 : vector<8x256xf32>
    %23 = vector.extract_strided_slice %22 {offsets = [0, 0], sizes = [8, 128], strides = [1, 1]} : vector<8x256xf32> to vector<8x128xf32>
    %24 = vector.extract_strided_slice %22 {offsets = [0, 128], sizes = [8, 128], strides = [1, 1]} : vector<8x256xf32> to vector<8x128xf32>
    %cst_14 = arith.constant 2.000000e+00 : f32
    %25 = vector.broadcast %cst_14 : f32 to vector<8x128xf32>
    %26 = arith.mulf %25, %23 : vector<8x128xf32>
    %cst_15 = arith.constant 1.000000e+00 : f32
    %27 = vector.broadcast %cst_15 : f32 to vector<8x128xf32>
    %28 = arith.subf %26, %27 : vector<8x128xf32>
    %29 = arith.select %12, %28, %23 : vector<8x128xi1>, vector<8x128xf32>
    %c64_i32_16 = arith.constant 64 : i32
    %30 = tpu.dynamic_rotate %29 by %c64_i32_16 dim 1 : vector<8x128xf32>, i32 -> vector<8x128xf32>
    %31 = arith.mulf %29, %30 : vector<8x128xf32>
    %32 = arith.mulf %24, %14 : vector<8x128xf32>
    %33 = arith.addf %32, %31 : vector<8x128xf32>
    %c64_i32_17 = arith.constant 64 : i32
    %34 = tpu.dynamic_rotate %24 by %c64_i32_17 dim 1 : vector<8x128xf32>, i32 -> vector<8x128xf32>
    %35 = math.tanh %33 : vector<8x128xf32>
    %36 = arith.mulf %34, %35 : vector<8x128xf32>
    %37 = vector.extract_strided_slice %8 {offsets = [8, 0], sizes = [8, 256], strides = [1, 1]} : vector<64x256xf32> to vector<8x256xf32>
    %cst_18 = arith.constant dense<0.000000e+00> : vector<8x256xf32>
    %38 = tpu.matmul %36, %9, %cst_18 {dimension_numbers = #tpu.dot_dimension_numbers<[1], [0], [0], [1], [0, 0, 1, 1], [], []>} : vector<8x128xf32>, vector<128x256xf32>, vector<8x256xf32> -> vector<8x256xf32>
    %39 = arith.addf %37, %38 : vector<8x256xf32>
    %40 = arith.negf %39 : vector<8x256xf32>
    %41 = math.exp %40 : vector<8x256xf32>
    %cst_19 = arith.constant 1.000000e+00 : f32
    %42 = vector.broadcast %cst_19 : f32 to vector<8x256xf32>
    %43 = arith.addf %42, %41 : vector<8x256xf32>
    %44 = arith.divf %42, %43 : vector<8x256xf32>
    %45 = vector.extract_strided_slice %44 {offsets = [0, 0], sizes = [8, 128], strides = [1, 1]} : vector<8x256xf32> to vector<8x128xf32>
    %46 = vector.extract_strided_slice %44 {offsets = [0, 128], sizes = [8, 128], strides = [1, 1]} : vector<8x256xf32> to vector<8x128xf32>
    %cst_20 = arith.constant 2.000000e+00 : f32
    %47 = vector.broadcast %cst_20 : f32 to vector<8x128xf32>
    %48 = arith.mulf %47, %45 : vector<8x128xf32>
    %cst_21 = arith.constant 1.000000e+00 : f32
    %49 = vector.broadcast %cst_21 : f32 to vector<8x128xf32>
    %50 = arith.subf %48, %49 : vector<8x128xf32>
    %51 = arith.select %12, %50, %45 : vector<8x128xi1>, vector<8x128xf32>
    %c64_i32_22 = arith.constant 64 : i32
    %52 = tpu.dynamic_rotate %51 by %c64_i32_22 dim 1 : vector<8x128xf32>, i32 -> vector<8x128xf32>
    %53 = arith.mulf %51, %52 : vector<8x128xf32>
    %54 = arith.mulf %46, %33 : vector<8x128xf32>
    %55 = arith.addf %54, %53 : vector<8x128xf32>
    %c64_i32_23 = arith.constant 64 : i32
    %56 = tpu.dynamic_rotate %46 by %c64_i32_23 dim 1 : vector<8x128xf32>, i32 -> vector<8x128xf32>
    %57 = math.tanh %55 : vector<8x128xf32>
    %58 = arith.mulf %56, %57 : vector<8x128xf32>
    %59 = vector.extract_strided_slice %8 {offsets = [16, 0], sizes = [8, 256], strides = [1, 1]} : vector<64x256xf32> to vector<8x256xf32>
    %cst_24 = arith.constant dense<0.000000e+00> : vector<8x256xf32>
    %60 = tpu.matmul %58, %9, %cst_24 {dimension_numbers = #tpu.dot_dimension_numbers<[1], [0], [0], [1], [0, 0, 1, 1], [], []>} : vector<8x128xf32>, vector<128x256xf32>, vector<8x256xf32> -> vector<8x256xf32>
    %61 = arith.addf %59, %60 : vector<8x256xf32>
    %62 = arith.negf %61 : vector<8x256xf32>
    %63 = math.exp %62 : vector<8x256xf32>
    %cst_25 = arith.constant 1.000000e+00 : f32
    %64 = vector.broadcast %cst_25 : f32 to vector<8x256xf32>
    %65 = arith.addf %64, %63 : vector<8x256xf32>
    %66 = arith.divf %64, %65 : vector<8x256xf32>
    %67 = vector.extract_strided_slice %66 {offsets = [0, 0], sizes = [8, 128], strides = [1, 1]} : vector<8x256xf32> to vector<8x128xf32>
    %68 = vector.extract_strided_slice %66 {offsets = [0, 128], sizes = [8, 128], strides = [1, 1]} : vector<8x256xf32> to vector<8x128xf32>
    %cst_26 = arith.constant 2.000000e+00 : f32
    %69 = vector.broadcast %cst_26 : f32 to vector<8x128xf32>
    %70 = arith.mulf %69, %67 : vector<8x128xf32>
    %cst_27 = arith.constant 1.000000e+00 : f32
    %71 = vector.broadcast %cst_27 : f32 to vector<8x128xf32>
    %72 = arith.subf %70, %71 : vector<8x128xf32>
    %73 = arith.select %12, %72, %67 : vector<8x128xi1>, vector<8x128xf32>
    %c64_i32_28 = arith.constant 64 : i32
    %74 = tpu.dynamic_rotate %73 by %c64_i32_28 dim 1 : vector<8x128xf32>, i32 -> vector<8x128xf32>
    %75 = arith.mulf %73, %74 : vector<8x128xf32>
    %76 = arith.mulf %68, %55 : vector<8x128xf32>
    %77 = arith.addf %76, %75 : vector<8x128xf32>
    %c64_i32_29 = arith.constant 64 : i32
    %78 = tpu.dynamic_rotate %68 by %c64_i32_29 dim 1 : vector<8x128xf32>, i32 -> vector<8x128xf32>
    %79 = math.tanh %77 : vector<8x128xf32>
    %80 = arith.mulf %78, %79 : vector<8x128xf32>
    %81 = vector.extract_strided_slice %8 {offsets = [24, 0], sizes = [8, 256], strides = [1, 1]} : vector<64x256xf32> to vector<8x256xf32>
    %cst_30 = arith.constant dense<0.000000e+00> : vector<8x256xf32>
    %82 = tpu.matmul %80, %9, %cst_30 {dimension_numbers = #tpu.dot_dimension_numbers<[1], [0], [0], [1], [0, 0, 1, 1], [], []>} : vector<8x128xf32>, vector<128x256xf32>, vector<8x256xf32> -> vector<8x256xf32>
    %83 = arith.addf %81, %82 : vector<8x256xf32>
    %84 = arith.negf %83 : vector<8x256xf32>
    %85 = math.exp %84 : vector<8x256xf32>
    %cst_31 = arith.constant 1.000000e+00 : f32
    %86 = vector.broadcast %cst_31 : f32 to vector<8x256xf32>
    %87 = arith.addf %86, %85 : vector<8x256xf32>
    %88 = arith.divf %86, %87 : vector<8x256xf32>
    %89 = vector.extract_strided_slice %88 {offsets = [0, 0], sizes = [8, 128], strides = [1, 1]} : vector<8x256xf32> to vector<8x128xf32>
    %90 = vector.extract_strided_slice %88 {offsets = [0, 128], sizes = [8, 128], strides = [1, 1]} : vector<8x256xf32> to vector<8x128xf32>
    %cst_32 = arith.constant 2.000000e+00 : f32
    %91 = vector.broadcast %cst_32 : f32 to vector<8x128xf32>
    %92 = arith.mulf %91, %89 : vector<8x128xf32>
    %cst_33 = arith.constant 1.000000e+00 : f32
    %93 = vector.broadcast %cst_33 : f32 to vector<8x128xf32>
    %94 = arith.subf %92, %93 : vector<8x128xf32>
    %95 = arith.select %12, %94, %89 : vector<8x128xi1>, vector<8x128xf32>
    %c64_i32_34 = arith.constant 64 : i32
    %96 = tpu.dynamic_rotate %95 by %c64_i32_34 dim 1 : vector<8x128xf32>, i32 -> vector<8x128xf32>
    %97 = arith.mulf %95, %96 : vector<8x128xf32>
    %98 = arith.mulf %90, %77 : vector<8x128xf32>
    %99 = arith.addf %98, %97 : vector<8x128xf32>
    %c64_i32_35 = arith.constant 64 : i32
    %100 = tpu.dynamic_rotate %90 by %c64_i32_35 dim 1 : vector<8x128xf32>, i32 -> vector<8x128xf32>
    %101 = math.tanh %99 : vector<8x128xf32>
    %102 = arith.mulf %100, %101 : vector<8x128xf32>
    %103 = vector.extract_strided_slice %8 {offsets = [32, 0], sizes = [8, 256], strides = [1, 1]} : vector<64x256xf32> to vector<8x256xf32>
    %cst_36 = arith.constant dense<0.000000e+00> : vector<8x256xf32>
    %104 = tpu.matmul %102, %9, %cst_36 {dimension_numbers = #tpu.dot_dimension_numbers<[1], [0], [0], [1], [0, 0, 1, 1], [], []>} : vector<8x128xf32>, vector<128x256xf32>, vector<8x256xf32> -> vector<8x256xf32>
    %105 = arith.addf %103, %104 : vector<8x256xf32>
    %106 = arith.negf %105 : vector<8x256xf32>
    %107 = math.exp %106 : vector<8x256xf32>
    %cst_37 = arith.constant 1.000000e+00 : f32
    %108 = vector.broadcast %cst_37 : f32 to vector<8x256xf32>
    %109 = arith.addf %108, %107 : vector<8x256xf32>
    %110 = arith.divf %108, %109 : vector<8x256xf32>
    %111 = vector.extract_strided_slice %110 {offsets = [0, 0], sizes = [8, 128], strides = [1, 1]} : vector<8x256xf32> to vector<8x128xf32>
    %112 = vector.extract_strided_slice %110 {offsets = [0, 128], sizes = [8, 128], strides = [1, 1]} : vector<8x256xf32> to vector<8x128xf32>
    %cst_38 = arith.constant 2.000000e+00 : f32
    %113 = vector.broadcast %cst_38 : f32 to vector<8x128xf32>
    %114 = arith.mulf %113, %111 : vector<8x128xf32>
    %cst_39 = arith.constant 1.000000e+00 : f32
    %115 = vector.broadcast %cst_39 : f32 to vector<8x128xf32>
    %116 = arith.subf %114, %115 : vector<8x128xf32>
    %117 = arith.select %12, %116, %111 : vector<8x128xi1>, vector<8x128xf32>
    %c64_i32_40 = arith.constant 64 : i32
    %118 = tpu.dynamic_rotate %117 by %c64_i32_40 dim 1 : vector<8x128xf32>, i32 -> vector<8x128xf32>
    %119 = arith.mulf %117, %118 : vector<8x128xf32>
    %120 = arith.mulf %112, %99 : vector<8x128xf32>
    %121 = arith.addf %120, %119 : vector<8x128xf32>
    %c64_i32_41 = arith.constant 64 : i32
    %122 = tpu.dynamic_rotate %112 by %c64_i32_41 dim 1 : vector<8x128xf32>, i32 -> vector<8x128xf32>
    %123 = math.tanh %121 : vector<8x128xf32>
    %124 = arith.mulf %122, %123 : vector<8x128xf32>
    %125 = vector.extract_strided_slice %8 {offsets = [40, 0], sizes = [8, 256], strides = [1, 1]} : vector<64x256xf32> to vector<8x256xf32>
    %cst_42 = arith.constant dense<0.000000e+00> : vector<8x256xf32>
    %126 = tpu.matmul %124, %9, %cst_42 {dimension_numbers = #tpu.dot_dimension_numbers<[1], [0], [0], [1], [0, 0, 1, 1], [], []>} : vector<8x128xf32>, vector<128x256xf32>, vector<8x256xf32> -> vector<8x256xf32>
    %127 = arith.addf %125, %126 : vector<8x256xf32>
    %128 = arith.negf %127 : vector<8x256xf32>
    %129 = math.exp %128 : vector<8x256xf32>
    %cst_43 = arith.constant 1.000000e+00 : f32
    %130 = vector.broadcast %cst_43 : f32 to vector<8x256xf32>
    %131 = arith.addf %130, %129 : vector<8x256xf32>
    %132 = arith.divf %130, %131 : vector<8x256xf32>
    %133 = vector.extract_strided_slice %132 {offsets = [0, 0], sizes = [8, 128], strides = [1, 1]} : vector<8x256xf32> to vector<8x128xf32>
    %134 = vector.extract_strided_slice %132 {offsets = [0, 128], sizes = [8, 128], strides = [1, 1]} : vector<8x256xf32> to vector<8x128xf32>
    %cst_44 = arith.constant 2.000000e+00 : f32
    %135 = vector.broadcast %cst_44 : f32 to vector<8x128xf32>
    %136 = arith.mulf %135, %133 : vector<8x128xf32>
    %cst_45 = arith.constant 1.000000e+00 : f32
    %137 = vector.broadcast %cst_45 : f32 to vector<8x128xf32>
    %138 = arith.subf %136, %137 : vector<8x128xf32>
    %139 = arith.select %12, %138, %133 : vector<8x128xi1>, vector<8x128xf32>
    %c64_i32_46 = arith.constant 64 : i32
    %140 = tpu.dynamic_rotate %139 by %c64_i32_46 dim 1 : vector<8x128xf32>, i32 -> vector<8x128xf32>
    %141 = arith.mulf %139, %140 : vector<8x128xf32>
    %142 = arith.mulf %134, %121 : vector<8x128xf32>
    %143 = arith.addf %142, %141 : vector<8x128xf32>
    %c64_i32_47 = arith.constant 64 : i32
    %144 = tpu.dynamic_rotate %134 by %c64_i32_47 dim 1 : vector<8x128xf32>, i32 -> vector<8x128xf32>
    %145 = math.tanh %143 : vector<8x128xf32>
    %146 = arith.mulf %144, %145 : vector<8x128xf32>
    %147 = vector.extract_strided_slice %8 {offsets = [48, 0], sizes = [8, 256], strides = [1, 1]} : vector<64x256xf32> to vector<8x256xf32>
    %cst_48 = arith.constant dense<0.000000e+00> : vector<8x256xf32>
    %148 = tpu.matmul %146, %9, %cst_48 {dimension_numbers = #tpu.dot_dimension_numbers<[1], [0], [0], [1], [0, 0, 1, 1], [], []>} : vector<8x128xf32>, vector<128x256xf32>, vector<8x256xf32> -> vector<8x256xf32>
    %149 = arith.addf %147, %148 : vector<8x256xf32>
    %150 = arith.negf %149 : vector<8x256xf32>
    %151 = math.exp %150 : vector<8x256xf32>
    %cst_49 = arith.constant 1.000000e+00 : f32
    %152 = vector.broadcast %cst_49 : f32 to vector<8x256xf32>
    %153 = arith.addf %152, %151 : vector<8x256xf32>
    %154 = arith.divf %152, %153 : vector<8x256xf32>
    %155 = vector.extract_strided_slice %154 {offsets = [0, 0], sizes = [8, 128], strides = [1, 1]} : vector<8x256xf32> to vector<8x128xf32>
    %156 = vector.extract_strided_slice %154 {offsets = [0, 128], sizes = [8, 128], strides = [1, 1]} : vector<8x256xf32> to vector<8x128xf32>
    %cst_50 = arith.constant 2.000000e+00 : f32
    %157 = vector.broadcast %cst_50 : f32 to vector<8x128xf32>
    %158 = arith.mulf %157, %155 : vector<8x128xf32>
    %cst_51 = arith.constant 1.000000e+00 : f32
    %159 = vector.broadcast %cst_51 : f32 to vector<8x128xf32>
    %160 = arith.subf %158, %159 : vector<8x128xf32>
    %161 = arith.select %12, %160, %155 : vector<8x128xi1>, vector<8x128xf32>
    %c64_i32_52 = arith.constant 64 : i32
    %162 = tpu.dynamic_rotate %161 by %c64_i32_52 dim 1 : vector<8x128xf32>, i32 -> vector<8x128xf32>
    %163 = arith.mulf %161, %162 : vector<8x128xf32>
    %164 = arith.mulf %156, %143 : vector<8x128xf32>
    %165 = arith.addf %164, %163 : vector<8x128xf32>
    %c64_i32_53 = arith.constant 64 : i32
    %166 = tpu.dynamic_rotate %156 by %c64_i32_53 dim 1 : vector<8x128xf32>, i32 -> vector<8x128xf32>
    %167 = math.tanh %165 : vector<8x128xf32>
    %168 = arith.mulf %166, %167 : vector<8x128xf32>
    %169 = vector.extract_strided_slice %8 {offsets = [56, 0], sizes = [8, 256], strides = [1, 1]} : vector<64x256xf32> to vector<8x256xf32>
    %cst_54 = arith.constant dense<0.000000e+00> : vector<8x256xf32>
    %170 = tpu.matmul %168, %9, %cst_54 {dimension_numbers = #tpu.dot_dimension_numbers<[1], [0], [0], [1], [0, 0, 1, 1], [], []>} : vector<8x128xf32>, vector<128x256xf32>, vector<8x256xf32> -> vector<8x256xf32>
    %171 = arith.addf %169, %170 : vector<8x256xf32>
    %172 = arith.negf %171 : vector<8x256xf32>
    %173 = math.exp %172 : vector<8x256xf32>
    %cst_55 = arith.constant 1.000000e+00 : f32
    %174 = vector.broadcast %cst_55 : f32 to vector<8x256xf32>
    %175 = arith.addf %174, %173 : vector<8x256xf32>
    %176 = arith.divf %174, %175 : vector<8x256xf32>
    %177 = vector.extract_strided_slice %176 {offsets = [0, 0], sizes = [8, 128], strides = [1, 1]} : vector<8x256xf32> to vector<8x128xf32>
    %178 = vector.extract_strided_slice %176 {offsets = [0, 128], sizes = [8, 128], strides = [1, 1]} : vector<8x256xf32> to vector<8x128xf32>
    %cst_56 = arith.constant 2.000000e+00 : f32
    %179 = vector.broadcast %cst_56 : f32 to vector<8x128xf32>
    %180 = arith.mulf %179, %177 : vector<8x128xf32>
    %cst_57 = arith.constant 1.000000e+00 : f32
    %181 = vector.broadcast %cst_57 : f32 to vector<8x128xf32>
    %182 = arith.subf %180, %181 : vector<8x128xf32>
    %183 = arith.select %12, %182, %177 : vector<8x128xi1>, vector<8x128xf32>
    %c64_i32_58 = arith.constant 64 : i32
    %184 = tpu.dynamic_rotate %183 by %c64_i32_58 dim 1 : vector<8x128xf32>, i32 -> vector<8x128xf32>
    %185 = arith.mulf %183, %184 : vector<8x128xf32>
    %186 = arith.mulf %178, %165 : vector<8x128xf32>
    %187 = arith.addf %186, %185 : vector<8x128xf32>
    %c64_i32_59 = arith.constant 64 : i32
    %188 = tpu.dynamic_rotate %178 by %c64_i32_59 dim 1 : vector<8x128xf32>, i32 -> vector<8x128xf32>
    %189 = math.tanh %187 : vector<8x128xf32>
    %190 = arith.mulf %188, %189 : vector<8x128xf32>
    %c0_60 = arith.constant 0 : index
    %c0_61 = arith.constant 0 : index
    %191 = vector.load %arg9[%c0_60, %c0_61] : memref<8x128xf32, #tpu.memory_space<vmem>>, vector<8x128xf32>
    tpu.vector_store %arg9[%c0_60, %c0_61], %190 {strides = array<i32>} : memref<8x128xf32, #tpu.memory_space<vmem>>, vector<8x128xf32>,
    %c0_62 = arith.constant 0 : index
    %c0_63 = arith.constant 0 : index
    %192 = vector.load %arg10[%c0_62, %c0_63] : memref<8x128xf32, #tpu.memory_space<vmem>>, vector<8x128xf32>
    tpu.vector_store %arg10[%c0_62, %c0_63], %187 {strides = array<i32>} : memref<8x128xf32, #tpu.memory_space<vmem>>, vector<8x128xf32>,
    %c1_i32 = arith.constant 1 : i32
    %193 = arith.cmpi eq, %arg1, %c1_i32 : i32
    %194 = arith.extui %193 : i1 to i32
    %c0_i32_64 = arith.constant 0 : i32
    %195 = arith.cmpi ne, %194, %c0_i32_64 : i32
    scf.if %195 {
      %c0_65 = arith.constant 0 : index
      %c0_66 = arith.constant 0 : index
      %196 = vector.load %arg6[%c0_65, %c0_66] : memref<128x16xf32, #tpu.memory_space<vmem>>, vector<128x16xf32>
      %cst_67 = arith.constant dense<0.000000e+00> : vector<8x16xf32>
      %197 = tpu.matmul %190, %196, %cst_67 {dimension_numbers = #tpu.dot_dimension_numbers<[1], [0], [0], [1], [0, 0, 1, 1], [], []>} : vector<8x128xf32>, vector<128x16xf32>, vector<8x16xf32> -> vector<8x16xf32>
      %c0_68 = arith.constant 0 : index
      %c0_69 = arith.constant 0 : index
      %198 = vector.load %arg7[%c0_68, %c0_69] : memref<1x16xf32, #tpu.memory_space<vmem>>, vector<1x16xf32>
      %199 = vector.broadcast %198 : vector<1x16xf32> to vector<8x16xf32>
      %200 = arith.addf %197, %199 : vector<8x16xf32>
      %c0_70 = arith.constant 0 : index
      %c0_71 = arith.constant 0 : index
      %201 = vector.load %arg8[%c0_70, %c0_71] : memref<8x16xf32, #tpu.memory_space<vmem>>, vector<8x16xf32>
      tpu.vector_store %arg8[%c0_70, %c0_71], %200 {strides = array<i32>} : memref<8x16xf32, #tpu.memory_space<vmem>>, vector<8x16xf32>,
    } else {
    }
    return
  }
  func.func @transform_0(%arg0: i32, %arg1: i32) -> (i32, i32) {
    %c2_i32 = arith.constant 2 : i32
    %0 = arith.muli %arg0, %c2_i32 : i32
    %1 = arith.addi %0, %arg1 : i32
    %c0_i32 = arith.constant 0 : i32
    %c0_i32_0 = arith.constant 0 : i32
    return %1, %c0_i32 : i32, i32
  }
  func.func @transform_1(%arg0: i32, %arg1: i32) -> (i32, i32) {
    %c0_i32 = arith.constant 0 : i32
    %c0_i32_0 = arith.constant 0 : i32
    %c0_i32_1 = arith.constant 0 : i32
    return %c0_i32, %c0_i32_0 : i32, i32
  }
  func.func @transform_2(%arg0: i32, %arg1: i32) -> (i32, i32) {
    %c0_i32 = arith.constant 0 : i32
    %c0_i32_0 = arith.constant 0 : i32
    %c0_i32_1 = arith.constant 0 : i32
    return %c0_i32, %c0_i32_0 : i32, i32
  }
  func.func @transform_3(%arg0: i32, %arg1: i32) -> (i32, i32) {
    %c0_i32 = arith.constant 0 : i32
    %c0_i32_0 = arith.constant 0 : i32
    %c0_i32_1 = arith.constant 0 : i32
    return %c0_i32, %c0_i32_0 : i32, i32
  }
  func.func @transform_4(%arg0: i32, %arg1: i32) -> (i32, i32) {
    %c0_i32 = arith.constant 0 : i32
    %c0_i32_0 = arith.constant 0 : i32
    %c0_i32_1 = arith.constant 0 : i32
    return %c0_i32, %c0_i32_0 : i32, i32
  }
  func.func @transform_5(%arg0: i32, %arg1: i32) -> (i32, i32) {
    %c0_i32 = arith.constant 0 : i32
    %c0_i32_0 = arith.constant 0 : i32
    %c0_i32_1 = arith.constant 0 : i32
    return %c0_i32, %c0_i32_0 : i32, i32
  }
  func.func @transform_6(%arg0: i32, %arg1: i32) -> (i32, i32) {
    %c0_i32 = arith.constant 0 : i32
    %c0_i32_0 = arith.constant 0 : i32
    return %arg0, %c0_i32 : i32, i32
  }
}

</mosaic_0001>

<bundles_post_ra>
// kernel: tpu_custom_call.1
= control target key start
LH: loop header
LB: loop body
LE: loop exit
PB: predicated region body
PF: predicated region fallthrough
CT: control target
= control target key end

     0   :  { %s2395_s0 = inlined_call_operand.vmem [shape: f32[256,16], index: 0, kind: input, shape index: {}]   ;;  %s2396_s1 = inlined_call_operand.vmem [shape: f32[16,256], index: 1, kind: input, shape index: {}]   ;;  %s2397_s2 = inlined_call_operand.vmem [shape: f32[128,256], index: 2, kind: input, shape index: {}]   ;;  %s2398_s3 = inlined_call_operand.vmem [shape: f32[1,256], index: 3, kind: input, shape index: {}]   ;;  %s2399_s4 = inlined_call_operand.vmem [shape: f32[128,16], index: 4, kind: input, shape index: {}]   ;;  %s2400_s5 = inlined_call_operand.vmem [shape: f32[1,16], index: 5, kind: input, shape index: {}]   ;;  %s2401_s6 = inlined_call_operand.hbm [shape: f32[16,16], index: 6, kind: output, shape index: {}]  }
   0x1   :  { %2403 = sst [smem:[#allocation8_spill]] %s2395_s0 }
   0x2   :  { %2404 = sst [smem:[#allocation9_spill]] %s2396_s1 }
   0x3   :  { %11 = vsyncpa [#allocation5], 0 }
   0x4   :  { %13 = vsyncpa [#allocation5 + $0x1], 0  ;;  %s1659_s21 = smov 0   ;;  %s1661_s22 = smov 0  }
   0x5   :  { %s1663_s23 = smov 0   ;;  %s1665_s24 = smov 0  }
   0x6   :  { %s1667_s25 = smov 0   ;;  %s1669_s26 = smov 0  }
   0x7   :  { %s1671_s27 = smov 0   ;;  %s1673_s28 = smov 0  }
   0x8 LB: > { %s1315_s29 = sadd.s32 4294967295, %s1620_s28   ;;  %s1316_s30 = sadd.s32 4294967294, %s1620_s28   ;;  %s1620_s28 = sphi %s1673_s28, %s19_s28   ;;  %s1616_s27 = sphi %s1671_s27, %s2418_s27   ;;  %s1612_s26 = sphi %s1669_s26, %s2417_s26   ;;  %s1608_s25 = sphi %s1667_s25, %s2416_s25   ;;  %s1604_s24 = sphi %s1665_s24, %s2415_s24   ;;  %s1600_s23 = sphi %s1663_s23, %s2414_s23   ;;  %s1596_s22 = sphi %s1661_s22, %s2413_s22   ;;  %s1592_s21 = sphi %s1659_s21, %s2412_s21  }
   0x9   : > { %s28_s7 = sadd.s32 1, %s1612_s26  ;;  %s31_s8 = sadd.s32 1, %s1616_s27 }
   0xa   : > { %p29_p0 = scmp.ge.s32.totalorder %s28_s7, 2  ;;  %p183_p1 = scmp.ne.s32.totalorder %s1600_s23, %s1596_s22 }
   0xb   : > { %p184_p2 = scmp.eq.s32.totalorder %s1315_s29, 3  ;;  %p189_p4 = scmp.ne.s32.totalorder %s1596_s22, %s1592_s21 }
   0xc   : > { %s2420_s7 = smov (%p29_p0, %s28_s7), 0  ;;  %s2422_s8 = smov (!%p29_p0, %s31_s8), %s1616_s27 }
   0xd   : > { %p1708_p3 = por %p184_p2, %p183_p1  ;;  %p33_p5 = scmp.ge.s32.totalorder %s2422_s8, 2 }
   0xe   : > { %p190_p6 = scmp.eq.s32.totalorder %s1316_s30, 3  ;;  %p1321_p7 = scmp.ge.s32.totalorder %s1620_s28, 1 }
   0xf   : > { %p236_p8 = scmp.lt.s32.totalorder %s1620_s28, 5  ;;  %s2424_s8 = smov (%p33_p5, %s2422_s8), 0 }
  0x10   : > { %p1718_p9 = por %p190_p6, %p189_p4  ;;  %s170_s11 = ssub.s32 %s1616_s27, %s2424_s8 }
  0x11   : > { %p237_p10 = pnand %p1321_p7, %p236_p8  ;;  %s173_s12 = sadd.s32 1, %s1600_s23 }
  0x12   : > { %p171_p11 = scmp.eq.s32.totalorder %s170_s11, 0 }
  0x13   : > { %240 = sbr.rel (%p237_p10) target bundleno = 2535 (0x9e7), region = 44 }
  0x14   : > { %s1726_s13 = scalar_select %p171_p11, %s1600_s23, %s173_s12  }
  0x18   : > { %s2402_s14 = sand.u32 1, %s1596_s22   ;;  %s1323_s15 = sshll.u32 %s1608_s25, 1 }
  0x19   : > { %s1732_s16 = sshll.u32 %s2402_s14, 3  ;;  %s269_s17 = sadd.s32 %s1604_s24, %s1323_s15 }
  0x1a   : > { %s1324_s18 = sshll.u32 %s269_s17, 3  ;;  %s2407_s0 = sld [smem:[#allocation8_spill]] }
  0x1b   : > { %p271_p12 = scmp.lt.s32.totalorder %s1324_s18, 31  ;;  %s267_s11 = scalar_lea.vmem [#allocation4], %s1732_s16 }
  0x1c   : > { %p1326_p13 = scmp.ne.s32.totalorder %s1604_s24, 0 }
  0x1d   : > { %s2426_s18 = smov (!%p271_p12, %s1324_s18), 31 }
  0x1e   : > { %s1325_s19 = sshll.u32 %s2426_s18, 3  ;;  %281 = sbr.rel (%p1326_p13) target bundleno = 38 (0x26), region = 48 }
  0x20   : > { %s1738_s30 = scalar_lea.vmem %s2407_s0, %s1325_s19 }
  0x23   : > { %v1622_v0 = vmov 0.0  }
  0x24   : > { %282 = vst [vmem:[#allocation2] sm:$0xff] %v1622_v0 }
  0x25   : > { %283 = vst [vmem:[#allocation3] sm:$0xff] %v1622_v0 }
  0x26 PF: > { %v1745_v1 = vld [vmem:[%s2397_s2 + $0xf0] sm:$0xff]  ;;  %v1750_v2 = vld [vmem:[%s2397_s2 + $0xe0] sm:$0xff]  ;;  %v1755_v3 = vld [vmem:[%s2397_s2 + $0xf8] sm:$0xff]  ;;  %s2408_s1 = sld [smem:[#allocation9_spill]]  ;;  %vm302_vm0 = vcmask 130048   ;;  %v441_v60 = vlaneseq  ;;  %s1623_s15 = smov 64  }
  0x27   : > { %446 = vmatpush.msra.mxu2 %v1745_v1  ;;  %466 = vmatpush.msra.mxu3 %v1755_v3  ;;  %v1762_v4 = vld [vmem:[%s2397_s2 + $0xe8] sm:$0xff]  ;;  %v1767_v5 = vld [vmem:[%s2397_s2 + $0xd0] sm:$0xff]  ;;  %v1772_v6 = vld [vmem:[%s2397_s2 + $0xd8] sm:$0xff]  ;;  %p1367_p0 = scmp.ne.s32.totalorder %s1604_s24, 1 }
  0x28   : > { %v1779_v7 = vld [vmem:[%s2397_s2 + $0xc0] sm:$0xff]  ;;  %v1784_v8 = vld [vmem:[%s2397_s2 + $0xc8] sm:$0xff]  ;;  %v1791_v9 = vld [vmem:[%s2397_s2 + $0xb0] sm:$0xff] }
  0x29   : > { %447 = vmatpush.msra.mxu2 %v1750_v2  ;;  %467 = vmatpush.msra.mxu3 %v1762_v4  ;;  %v1796_v10 = vld [vmem:[%s2397_s2 + $0xb8] sm:$0xff]  ;;  %v1803_v11 = vld [vmem:[%s2397_s2 + $0xa0] sm:$0xff]  ;;  %v1808_v12 = vld [vmem:[%s2397_s2 + $0xa8] sm:$0xff] }
  0x2a   : > { %v1815_v13 = vld [vmem:[%s2397_s2 + $0x90] sm:$0xff]  ;;  %v1820_v14 = vld [vmem:[%s2397_s2 + $0x98] sm:$0xff]  ;;  %v1833_v17 = vld [vmem:[%s2397_s2 + $0x80] sm:$0xff] }
  0x2b   : > { %448 = vmatpush.msra.mxu2 %v1767_v5  ;;  %468 = vmatpush.msra.mxu3 %v1772_v6  ;;  %v1838_v18 = vld [vmem:[%s2397_s2 + $0x88] sm:$0xff]  ;;  %v284_v20 = vld [vmem:[%s1738_s30] sm:$0xff]  ;;  %v1852_v22 = vld [vmem:[%s2397_s2 + $0x70] sm:$0xff] }
  0x2c   : > { %v294_v15 = vld [vmem:[%s2408_s1 + $0x10] sm:$0xff]  ;;  %v292_v16 = vld [vmem:[%s2408_s1] sm:$0xff]  ;;  %v295_v19 = vld [vmem:[%s2408_s1 + $0x18] sm:$0xff] }
  0x2d   : > { %449 = vmatpush.msra.mxu2 %v1779_v7  ;;  %469 = vmatpush.msra.mxu3 %v1784_v8  ;;  %v293_v21 = vld [vmem:[%s2408_s1 + $0x8] sm:$0xff]  ;;  %v1857_v23 = vld [vmem:[%s2397_s2 + $0x78] sm:$0xff]  ;;  %v1864_v24 = vld [vmem:[%s2397_s2 + $0x60] sm:$0xff] }
  0x2e   : > { %341 = vmatpush.msra.mxu0 %v294_v15  ;;  %382 = vmatpush.msra.mxu1 %v295_v19  ;;  %v1869_v25 = vld [vmem:[%s2397_s2 + $0x68] sm:$0xff]  ;;  %v1877_v26 = vld [vmem:[%s2397_s2 + $0x50] sm:$0xff]  ;;  %v1882_v27 = vld [vmem:[%s2397_s2 + $0x58] sm:$0xff] }
  0x2f   : > { %450 = vmatpush.msra.mxu2 %v1791_v9  ;;  %470 = vmatpush.msra.mxu3 %v1796_v10  ;;  %v1891_v28 = vld [vmem:[%s2397_s2 + $0x40] sm:$0xff]  ;;  %v1896_v29 = vld [vmem:[%s2397_s2 + $0x48] sm:$0xff]  ;;  %v1905_v30 = vld [vmem:[%s2397_s2 + $0x30] sm:$0xff] }
  0x30   : > { %342 = vmatpush.msra.mxu0 %v292_v16  ;;  %383 = vmatpush.msra.mxu1 %v293_v21  ;;  %v1910_v31 = vld [vmem:[%s2397_s2 + $0x38] sm:$0xff]  ;;  %v1919_v32 = vld [vmem:[%s2397_s2 + $0x20] sm:$0xff]  ;;  %v1924_v33 = vld [vmem:[%s2397_s2 + $0x28] sm:$0xff]  ;;  %v2086_v16 = vand.u32 127, %v441_v60 }
  0x31   : > { %451 = vmatpush.msra.mxu2 %v1803_v11  ;;  %471 = vmatpush.msra.mxu3 %v1808_v12  ;;  %v1933_v34 = vld [vmem:[%s2397_s2 + $0x10] sm:$0xff]  ;;  %v1938_v35 = vld [vmem:[%s2397_s2 + $0x18] sm:$0xff]  ;;  %v1947_v36 = vld [vmem:[%s2397_s2] sm:$0xff] }
  0x32   : > { %1327 = vmatmul.msk.f32.vlgmr.msra.gmra.mxu0 %vm302_vm0, %v284_v20  ;;  %1335 = vmatmul.msk.f32.vlgmr.msra.gmra.mxu1 %vm302_vm0, %v284_v20  ;;  %v1952_v37 = vld [vmem:[%s2397_s2 + $0x8] sm:$0xff]  ;;  %v444_v38 = vld [vmem:[#allocation2] sm:$0xff]  ;;  %vm443_vm5 = vcmp.ge.s32.totalorder %v2086_v16, 64 }
  0x33   : > { %452 = vmatpush.msra.mxu2 %v1815_v13  ;;  %472 = vmatpush.msra.mxu3 %v1820_v14  ;;  %v296_v39 = vld [vmem:[%s2398_s3] sm:$0x3] }
  0x34   : > { %630 = vmatpush.msrb.mxu0 %v1745_v1  ;;  %650 = vmatpush.msrb.mxu1 %v1755_v3  ;;  %v2080_v40 = vperm.slane %v296_v39, 0  ;;  %v2082_v41 = vperm.slane %v296_v39, 1 }
  0x35   : > { %453 = vmatpush.msra.mxu2 %v1833_v17  ;;  %473 = vmatpush.msra.mxu3 %v1838_v18 }
  0x36   : > { %631 = vmatpush.msrb.mxu0 %v1750_v2  ;;  %651 = vmatpush.msrb.mxu1 %v1762_v4 }
  0x37   : > { %454 = vmatpush.msra.mxu2 %v1852_v22  ;;  %474 = vmatpush.msra.mxu3 %v1857_v23 }
  0x38   : > { %632 = vmatpush.msrb.mxu0 %v1767_v5  ;;  %652 = vmatpush.msrb.mxu1 %v1772_v6 }
  0x39   : > { %455 = vmatpush.msra.mxu2 %v1864_v24  ;;  %475 = vmatpush.msra.mxu3 %v1869_v25 }
  0x3a   : > { %633 = vmatpush.msrb.mxu0 %v1779_v7  ;;  %653 = vmatpush.msrb.mxu1 %v1784_v8 }
  0x3b   : > { %456 = vmatpush.msra.mxu2 %v1877_v26  ;;  %476 = vmatpush.msra.mxu3 %v1882_v27 }
  0x3c   : > { %634 = vmatpush.msrb.mxu0 %v1791_v9  ;;  %654 = vmatpush.msrb.mxu1 %v1796_v10 }
  0x3d   : > { %457 = vmatpush.msra.mxu2 %v1891_v28  ;;  %477 = vmatpush.msra.mxu3 %v1896_v29 }
  0x3e   : > { %635 = vmatpush.msrb.mxu0 %v1803_v11  ;;  %655 = vmatpush.msrb.mxu1 %v1808_v12 }
  0x3f   : > { %458 = vmatpush.msra.mxu2 %v1905_v30  ;;  %478 = vmatpush.msra.mxu3 %v1910_v31 }
  0x40   : > { %636 = vmatpush.msrb.mxu0 %v1815_v13  ;;  %656 = vmatpush.msrb.mxu1 %v1820_v14 }
  0x41   : > { %459 = vmatpush.msra.mxu2 %v1919_v32  ;;  %479 = vmatpush.msra.mxu3 %v1924_v33 }
  0x42   : > { %637 = vmatpush.msrb.mxu0 %v1833_v17  ;;  %657 = vmatpush.msrb.mxu1 %v1838_v18 }
  0x43   : > { %460 = vmatpush.msra.mxu2 %v1933_v34  ;;  %480 = vmatpush.msra.mxu3 %v1938_v35 }
  0x44   : > { %638 = vmatpush.msrb.mxu0 %v1852_v22  ;;  %658 = vmatpush.msrb.mxu1 %v1857_v23 }
  0x45   : > { %461 = vmatpush.msra.mxu2 %v1947_v36  ;;  %481 = vmatpush.msra.mxu3 %v1952_v37 }
  0x46   : > { %462 = vmatmul.f32.vlgmr.msra.gmra.mxu2 %v444_v38  ;;  %482 = vmatmul.f32.vlgmr.msra.gmra.mxu3 %v444_v38 }
  0x47   : > { %538 = vmatpush.msrb.mxu2 %v1745_v1  ;;  %558 = vmatpush.msrb.mxu3 %v1755_v3 }
  0x48   : > { %639 = vmatpush.msrb.mxu0 %v1864_v24  ;;  %659 = vmatpush.msrb.mxu1 %v1869_v25 }
  0x49   : > { %539 = vmatpush.msrb.mxu2 %v1750_v2  ;;  %559 = vmatpush.msrb.mxu3 %v1762_v4 }
  0x4a   : > { %640 = vmatpush.msrb.mxu0 %v1877_v26  ;;  %660 = vmatpush.msrb.mxu1 %v1882_v27 }
  0x4b   : > { %540 = vmatpush.msrb.mxu2 %v1767_v5  ;;  %560 = vmatpush.msrb.mxu3 %v1772_v6 }
  0x4c   : > { %641 = vmatpush.msrb.mxu0 %v1891_v28  ;;  %661 = vmatpush.msrb.mxu1 %v1896_v29 }
  0x4d   : > { %541 = vmatpush.msrb.mxu2 %v1779_v7  ;;  %561 = vmatpush.msrb.mxu3 %v1784_v8 }
  0x4e   : > { %642 = vmatpush.msrb.mxu0 %v1905_v30  ;;  %662 = vmatpush.msrb.mxu1 %v1910_v31 }
  0x4f   : > { %542 = vmatpush.msrb.mxu2 %v1791_v9  ;;  %562 = vmatpush.msrb.mxu3 %v1796_v10 }
  0x50   : > { %643 = vmatpush.msrb.mxu0 %v1919_v32  ;;  %663 = vmatpush.msrb.mxu1 %v1924_v33 }
  0x51   : > { %543 = vmatpush.msrb.mxu2 %v1803_v11  ;;  %563 = vmatpush.msrb.mxu3 %v1808_v12 }
  0x52   : > { %644 = vmatpush.msrb.mxu0 %v1933_v34  ;;  %664 = vmatpush.msrb.mxu1 %v1938_v35 }
  0x53   : > { %544 = vmatpush.msrb.mxu2 %v1815_v13  ;;  %564 = vmatpush.msrb.mxu3 %v1820_v14 }
  0x54   : > { %645 = vmatpush.msrb.mxu0 %v1947_v36  ;;  %665 = vmatpush.msrb.mxu1 %v1952_v37 }
  0x55   : > { %545 = vmatpush.msrb.mxu2 %v1833_v17  ;;  %565 = vmatpush.msrb.mxu3 %v1838_v18 }
  0x56   : > { %814 = vmatpush.msra.mxu0 %v1745_v1  ;;  %834 = vmatpush.msra.mxu1 %v1755_v3 }
  0x57   : > { %546 = vmatpush.msrb.mxu2 %v1852_v22  ;;  %566 = vmatpush.msrb.mxu3 %v1857_v23 }
  0x58   : > { %815 = vmatpush.msra.mxu0 %v1750_v2  ;;  %835 = vmatpush.msra.mxu1 %v1762_v4 }
  0x59   : > { %547 = vmatpush.msrb.mxu2 %v1864_v24  ;;  %567 = vmatpush.msrb.mxu3 %v1869_v25 }
  0x5a   : > { %816 = vmatpush.msra.mxu0 %v1767_v5  ;;  %836 = vmatpush.msra.mxu1 %v1772_v6 }
  0x5b   : > { %548 = vmatpush.msrb.mxu2 %v1877_v26  ;;  %568 = vmatpush.msrb.mxu3 %v1882_v27 }
  0x5c   : > { %817 = vmatpush.msra.mxu0 %v1779_v7  ;;  %837 = vmatpush.msra.mxu1 %v1784_v8 }
  0x5d   : > { %549 = vmatpush.msrb.mxu2 %v1891_v28  ;;  %569 = vmatpush.msrb.mxu3 %v1896_v29 }
  0x5e   : > { %818 = vmatpush.msra.mxu0 %v1791_v9  ;;  %838 = vmatpush.msra.mxu1 %v1796_v10 }
  0x5f   : > { %550 = vmatpush.msrb.mxu2 %v1905_v30  ;;  %570 = vmatpush.msrb.mxu3 %v1910_v31 }
  0x60   : > { %819 = vmatpush.msra.mxu0 %v1803_v11  ;;  %839 = vmatpush.msra.mxu1 %v1808_v12 }
  0x61   : > { %551 = vmatpush.msrb.mxu2 %v1919_v32  ;;  %571 = vmatpush.msrb.mxu3 %v1924_v33 }
  0x62   : > { %820 = vmatpush.msra.mxu0 %v1815_v13  ;;  %840 = vmatpush.msra.mxu1 %v1820_v14 }
  0x63   : > { %552 = vmatpush.msrb.mxu2 %v1933_v34  ;;  %572 = vmatpush.msrb.mxu3 %v1938_v35 }
  0x64   : > { %821 = vmatpush.msra.mxu0 %v1833_v17  ;;  %841 = vmatpush.msra.mxu1 %v1838_v18 }
  0x65   : > { %553 = vmatpush.msrb.mxu2 %v1947_v36  ;;  %573 = vmatpush.msrb.mxu3 %v1952_v37 }
  0x66   : > { %822 = vmatpush.msra.mxu0 %v1852_v22  ;;  %842 = vmatpush.msra.mxu1 %v1857_v23 }
  0x67   : > { %722 = vmatpush.msra.mxu2 %v1745_v1  ;;  %742 = vmatpush.msra.mxu3 %v1755_v3 }
  0x68   : > { %823 = vmatpush.msra.mxu0 %v1864_v24  ;;  %843 = vmatpush.msra.mxu1 %v1869_v25 }
  0x69   : > { %723 = vmatpush.msra.mxu2 %v1750_v2  ;;  %743 = vmatpush.msra.mxu3 %v1762_v4 }
  0x6a   : > { %824 = vmatpush.msra.mxu0 %v1877_v26  ;;  %844 = vmatpush.msra.mxu1 %v1882_v27 }
  0x6b   : > { %724 = vmatpush.msra.mxu2 %v1767_v5  ;;  %744 = vmatpush.msra.mxu3 %v1772_v6 }
  0x6c   : > { %825 = vmatpush.msra.mxu0 %v1891_v28  ;;  %845 = vmatpush.msra.mxu1 %v1896_v29 }
  0x6d   : > { %725 = vmatpush.msra.mxu2 %v1779_v7  ;;  %745 = vmatpush.msra.mxu3 %v1784_v8 }
  0x6e   : > { %826 = vmatpush.msra.mxu0 %v1905_v30  ;;  %846 = vmatpush.msra.mxu1 %v1910_v31 }
  0x6f   : > { %726 = vmatpush.msra.mxu2 %v1791_v9  ;;  %746 = vmatpush.msra.mxu3 %v1796_v10 }
  0x70   : > { %827 = vmatpush.msra.mxu0 %v1919_v32  ;;  %847 = vmatpush.msra.mxu1 %v1924_v33 }
  0x71   : > { %727 = vmatpush.msra.mxu2 %v1803_v11  ;;  %747 = vmatpush.msra.mxu3 %v1808_v12 }
  0x72   : > { %828 = vmatpush.msra.mxu0 %v1933_v34  ;;  %848 = vmatpush.msra.mxu1 %v1938_v35 }
  0x73   : > { %728 = vmatpush.msra.mxu2 %v1815_v13  ;;  %748 = vmatpush.msra.mxu3 %v1820_v14 }
  0x74   : > { %829 = vmatpush.msra.mxu0 %v1947_v36  ;;  %849 = vmatpush.msra.mxu1 %v1952_v37 }
  0x75   : > { %729 = vmatpush.msra.mxu2 %v1833_v17  ;;  %749 = vmatpush.msra.mxu3 %v1838_v18 }
  0x77   : > { %730 = vmatpush.msra.mxu2 %v1852_v22  ;;  %750 = vmatpush.msra.mxu3 %v1857_v23 }
  0x79   : > { %731 = vmatpush.msra.mxu2 %v1864_v24  ;;  %751 = vmatpush.msra.mxu3 %v1869_v25 }
  0x7b   : > { %732 = vmatpush.msra.mxu2 %v1877_v26  ;;  %752 = vmatpush.msra.mxu3 %v1882_v27 }
  0x7d   : > { %733 = vmatpush.msra.mxu2 %v1891_v28  ;;  %753 = vmatpush.msra.mxu3 %v1896_v29 }
  0x7f   : > { %734 = vmatpush.msra.mxu2 %v1905_v30  ;;  %754 = vmatpush.msra.mxu3 %v1910_v31 }
  0x81   : > { %735 = vmatpush.msra.mxu2 %v1919_v32  ;;  %755 = vmatpush.msra.mxu3 %v1924_v33 }
  0x83   : > { %736 = vmatpush.msra.mxu2 %v1933_v34  ;;  %756 = vmatpush.msra.mxu3 %v1938_v35 }
  0x85   : > { %737 = vmatpush.msra.mxu2 %v1947_v36  ;;  %757 = vmatpush.msra.mxu3 %v1952_v37 }
  0xaf   : > { %v344_v42 = vpop.f32.mrf.mxu0  ;;  %v385_v43 = vpop.f32.mrf.mxu1 }
  0xb0   : > { %v345_v44 = vadd.f32 %v344_v42, %v2080_v40  ;;  %v386_v45 = vadd.f32 %v385_v43, %v2082_v41 }
  0xc9   : > { %v463_v46 = vpop.f32.mrf.mxu2  ;;  %v483_v47 = vpop.f32.mrf.mxu3 }
  0xca   : > { %v486_v48 = vadd.f32 %v463_v46, %v345_v44  ;;  %v487_v49 = vadd.f32 %v483_v47, %v386_v45 }
  0xcc   : > { %v1343_v50 = vmul.f32 -1.442695, %v486_v48  ;;  %v1344_v51 = vmul.f32 -1.442695, %v487_v49 }
  0xce   : > { %1445 = vpow2.f32 %v1343_v50 }
  0xcf   : > { %1447 = vpow2.f32 %v1344_v51  ;;  %v285_v51 = vld [vmem:[%s1738_s30 + $0x8] sm:$0xff] }
  0xd0   : > { %1328 = vmatmul.msk.f32.gmra.mxu0 %vm302_vm0, %v285_v51  ;;  %1336 = vmatmul.msk.f32.gmra.mxu1 %vm302_vm0, %v285_v51 }
  0xd4   : > { %v1446_v52 = vpop.eup %1445 }
  0xd5   : > { %v1448_v53 = vpop.eup %1447  ;;  %v494_v54 = vadd.f32 1.0, %v1446_v52  ;;  %v445_v52 = vld [vmem:[#allocation3] sm:$0xff] }
  0xd6   : > { %v495_v55 = vadd.f32 1.0, %v1448_v53 }
  0xd7   : > { %1449 = vrcp.f32 %v494_v54  ;;  %v507_v61 = vand.u32 2147483648, %v494_v54  ;;  %v505_v0 = vand.u32 2147483647, %v494_v54  ;;  %vm501_vm2 = vweird.f32 %v494_v54 }
  0xd8   : > { %1451 = vrcp.f32 %v495_v55  ;;  %vm516_vm6 = vweird.f32 %v495_v55  ;;  %v522_v45 = vand.u32 2147483648, %v495_v55  ;;  %v520_v47 = vand.u32 2147483647, %v495_v55 }
  0xd9   : > { %v508_v19 = vor.u32 1.1754944e-38, %v507_v61  ;;  %vm506_vm4 = vcmp.eq.f32.partialorder %v505_v0, 8.507059e+37 }
  0xda   : > { %v523_v48 = vor.u32 1.1754944e-38, %v522_v45  ;;  %vm521_vm9 = vcmp.eq.f32.partialorder %v520_v47, 8.507059e+37 }
  0xdd   : > { %v1450_v56 = vpop.eup %1449 }
  0xde   : > { %v1452_v57 = vpop.eup %1451  ;;  %v497_v58 = vmul.f32 %v1450_v56, %v494_v54  ;;  %vm502_vm1 = vweird.f32 %v1450_v56 }
  0xdf   : > { %v512_v62 = vmul.f32 %v1452_v57, %v495_v55  ;;  %vm503_vm3 = vmor %vm501_vm2, %vm502_vm1  ;;  %vm517_vm7 = vweird.f32 %v1452_v57 }
  0xe0   : > { %v498_v59 = vsub.f32 1.0, %v497_v58  ;;  %vm518_vm8 = vmor %vm516_vm6, %vm517_vm7 }
  0xe1   : > { %v513_v20 = vsub.f32 1.0, %v512_v62 }
  0xe2   : > { %v499_v63 = vmul.f32 %v1450_v56, %v498_v59 }
  0xe3   : > { %v514_v42 = vmul.f32 %v1452_v57, %v513_v20 }
  0xe4   : > { %v500_v15 = vadd.f32 %v1450_v56, %v499_v63 }
  0xe5   : > { %v515_v46 = vadd.f32 %v1452_v57, %v514_v42 }
  0xe6   : > { %v504_v21 = vsel %vm503_vm3, %v1450_v56, %v500_v15 }
  0xe7   : > { %v509_v38 = vsel %vm506_vm4, %v508_v19, %v504_v21  ;;  %v519_v49 = vsel %vm518_vm8, %v1452_v57, %v515_v46  ;;  %v287_v46 = vld [vmem:[%s1738_s30 + $0x18] sm:$0xff] }
  0xe8   : > { %v526_v39 = vmul.f32 2.0, %v509_v38  ;;  %v524_v50 = vsel %vm521_vm9, %v523_v48, %v519_v49 }
  0xe9   : > { %v532_v54 = vmul.f32 %v524_v50, %v445_v52 }
  0xea   : > { %v1345_v43 = vadd.f32 -1.0, %v526_v39 }
  0xec   : > { %v528_v44 = vsel %vm443_vm5, %v1345_v43, %v509_v38 }
  0xed   : > { %529 = vrot.lane.b32.xlu0 %v528_v44, %s1623_s15 }
  0xf5   : > { %534 = vrot.lane.b32.xlu0 %v524_v50, %s1623_s15 }
 0x14d   : > { %v347_v60 = vpop.f32.mrf.mxu0  ;;  %v388_v61 = vpop.f32.mrf.mxu1 }
 0x14e   : > { %v348_v62 = vadd.f32 %v347_v60, %v2080_v40  ;;  %v389_v63 = vadd.f32 %v388_v61, %v2082_v41 }
 0x15f   : > { %v530_v53 = vpop.permute.xlu0 %529 }
 0x160   : > { %v531_v56 = vmul.f32 %v530_v53, %v528_v44  ;;  %v286_v44 = vld [vmem:[%s1738_s30 + $0x10] sm:$0xff] }
 0x161   : > { %1329 = vmatmul.msk.f32.gmra.mxu0 %vm302_vm0, %v286_v44  ;;  %1337 = vmatmul.msk.f32.gmra.mxu1 %vm302_vm0, %v286_v44 }
 0x162   : > { %v2096_v58 = vadd.f32 %v532_v54, %v531_v56  ;;  %v288_v56 = vld [vmem:[%s1738_s30 + $0x20] sm:$0xff] }
 0x164   : > { %1453 = vtanh.f32 %v2096_v58 }
 0x167   : > { %v535_v59 = vpop.permute.xlu0 %534 }
 0x169   : > { %1330 = vmatmul.msk.f32.gmra.mxu0 %vm302_vm0, %v287_v46  ;;  %1338 = vmatmul.msk.f32.gmra.mxu1 %vm302_vm0, %v287_v46  ;;  %v291_v46 = vld [vmem:[%s1738_s30 + $0x38] sm:$0xff] }
 0x16a   : > { %v1454_v55 = vpop.eup %1453 }
 0x16b   : > { %v537_v57 = vmul.f32 %v1454_v55, %v535_v59 }
 0x16d   : > { %554 = vmatmul.f32.vlgmr.msrb.gmra.mxu2 %v537_v57  ;;  %574 = vmatmul.f32.vlgmr.msrb.gmra.mxu3 %v537_v57 }
 0x16e   : > { %906 = vmatpush.msrb.mxu2 %v1745_v1  ;;  %926 = vmatpush.msrb.mxu3 %v1755_v3 }
 0x170   : > { %907 = vmatpush.msrb.mxu2 %v1750_v2  ;;  %927 = vmatpush.msrb.mxu3 %v1762_v4 }
 0x171   : > { %1331 = vmatmul.msk.f32.gmra.mxu0 %vm302_vm0, %v288_v56  ;;  %1339 = vmatmul.msk.f32.gmra.mxu1 %vm302_vm0, %v288_v56 }
 0x172   : > { %908 = vmatpush.msrb.mxu2 %v1767_v5  ;;  %928 = vmatpush.msrb.mxu3 %v1772_v6 }
 0x174   : > { %909 = vmatpush.msrb.mxu2 %v1779_v7  ;;  %929 = vmatpush.msrb.mxu3 %v1784_v8 }
 0x176   : > { %910 = vmatpush.msrb.mxu2 %v1791_v9  ;;  %930 = vmatpush.msrb.mxu3 %v1796_v10 }
 0x178   : > { %911 = vmatpush.msrb.mxu2 %v1803_v11  ;;  %931 = vmatpush.msrb.mxu3 %v1808_v12 }
 0x17a   : > { %912 = vmatpush.msrb.mxu2 %v1815_v13  ;;  %932 = vmatpush.msrb.mxu3 %v1820_v14 }
 0x17c   : > { %913 = vmatpush.msrb.mxu2 %v1833_v17  ;;  %933 = vmatpush.msrb.mxu3 %v1838_v18 }
 0x17e   : > { %914 = vmatpush.msrb.mxu2 %v1852_v22  ;;  %934 = vmatpush.msrb.mxu3 %v1857_v23 }
 0x180   : > { %915 = vmatpush.msrb.mxu2 %v1864_v24  ;;  %935 = vmatpush.msrb.mxu3 %v1869_v25 }
 0x182   : > { %916 = vmatpush.msrb.mxu2 %v1877_v26  ;;  %936 = vmatpush.msrb.mxu3 %v1882_v27 }
 0x184   : > { %917 = vmatpush.msrb.mxu2 %v1891_v28  ;;  %937 = vmatpush.msrb.mxu3 %v1896_v29 }
 0x186   : > { %918 = vmatpush.msrb.mxu2 %v1905_v30  ;;  %938 = vmatpush.msrb.mxu3 %v1910_v31 }
 0x188   : > { %919 = vmatpush.msrb.mxu2 %v1919_v32  ;;  %939 = vmatpush.msrb.mxu3 %v1924_v33 }
 0x18a   : > { %920 = vmatpush.msrb.mxu2 %v1933_v34  ;;  %940 = vmatpush.msrb.mxu3 %v1938_v35 }
 0x18c   : > { %921 = vmatpush.msrb.mxu2 %v1947_v36  ;;  %941 = vmatpush.msrb.mxu3 %v1952_v37 }
 0x1f0   : > { %v555_v0 = vpop.f32.mrf.mxu2  ;;  %v575_v15 = vpop.f32.mrf.mxu3 }
 0x1f1   : > { %v578_v19 = vadd.f32 %v555_v0, %v348_v62  ;;  %v579_v20 = vadd.f32 %v575_v15, %v389_v63  ;;  %v289_v15 = vld [vmem:[%s1738_s30 + $0x28] sm:$0xff] }
 0x1f2   : > { %1332 = vmatmul.msk.f32.gmra.mxu0 %vm302_vm0, %v289_v15  ;;  %1340 = vmatmul.msk.f32.gmra.mxu1 %vm302_vm0, %v289_v15 }
 0x1f3   : > { %v1346_v21 = vmul.f32 -1.442695, %v578_v19  ;;  %v1347_v38 = vmul.f32 -1.442695, %v579_v20 }
 0x1f5   : > { %1455 = vpow2.f32 %v1346_v21 }
 0x1f6   : > { %1457 = vpow2.f32 %v1347_v38 }
 0x1fb   : > { %v1456_v39 = vpop.eup %1455 }
 0x1fc   : > { %v1458_v42 = vpop.eup %1457  ;;  %v586_v43 = vadd.f32 1.0, %v1456_v39 }
 0x1fd   : > { %v587_v45 = vadd.f32 1.0, %v1458_v42 }
 0x1fe   : > { %1459 = vrcp.f32 %v586_v43  ;;  %v599_v51 = vand.u32 2147483648, %v586_v43  ;;  %v597_v54 = vand.u32 2147483647, %v586_v43  ;;  %vm593_vm11 = vweird.f32 %v586_v43 }
 0x1ff   : > { %1461 = vrcp.f32 %v587_v45  ;;  %v614_v21 = vand.u32 2147483648, %v587_v45  ;;  %vm608_vm15 = vweird.f32 %v587_v45  ;;  %v612_v38 = vand.u32 2147483647, %v587_v45 }
 0x200   : > { %v600_v59 = vor.u32 1.1754944e-38, %v599_v51  ;;  %vm598_vm13 = vcmp.eq.f32.partialorder %v597_v54, 8.507059e+37 }
 0x201   : > { %v615_v42 = vor.u32 1.1754944e-38, %v614_v21  ;;  %vm613_vm2 = vcmp.eq.f32.partialorder %v612_v38, 8.507059e+37 }
 0x204   : > { %v1460_v47 = vpop.eup %1459 }
 0x205   : > { %v1462_v48 = vpop.eup %1461  ;;  %v589_v49 = vmul.f32 %v1460_v47, %v586_v43  ;;  %vm594_vm10 = vweird.f32 %v1460_v47  ;;  %v290_v43 = vld [vmem:[%s1738_s30 + $0x30] sm:$0xff] }
 0x206   : > { %v604_v52 = vmul.f32 %v1462_v48, %v587_v45  ;;  %vm595_vm12 = vmor %vm593_vm11, %vm594_vm10  ;;  %vm609_vm14 = vweird.f32 %v1462_v48  ;;  %1333 = vmatmul.msk.f32.gmra.mxu0 %vm302_vm0, %v290_v43  ;;  %1341 = vmatmul.msk.f32.gmra.mxu1 %vm302_vm0, %v290_v43 }
 0x207   : > { %v590_v50 = vsub.f32 1.0, %v589_v49  ;;  %vm610_vm1 = vmor %vm608_vm15, %vm609_vm14 }
 0x208   : > { %v605_v57 = vsub.f32 1.0, %v604_v52 }
 0x209   : > { %v591_v53 = vmul.f32 %v1460_v47, %v590_v50 }
 0x20a   : > { %v606_v63 = vmul.f32 %v1462_v48, %v605_v57 }
 0x20b   : > { %v592_v55 = vadd.f32 %v1460_v47, %v591_v53  ;;  %v391_v53 = vpop.f32.mrf.mxu1 }
 0x20c   : > { %v607_v20 = vadd.f32 %v1462_v48, %v606_v63 }
 0x20d   : > { %v596_v60 = vsel %vm595_vm12, %v1460_v47, %v592_v55 }
 0x20e   : > { %v601_v61 = vsel %vm598_vm13, %v600_v59, %v596_v60  ;;  %v611_v39 = vsel %vm610_vm1, %v1462_v48, %v607_v20  ;;  %1334 = vmatmul.msk.f32.gmra.mxu0 %vm302_vm0, %v291_v46  ;;  %1342 = vmatmul.msk.f32.gmra.mxu1 %vm302_vm0, %v291_v46 }
 0x20f   : > { %v618_v62 = vmul.f32 2.0, %v601_v61  ;;  %v616_v44 = vsel %vm613_vm2, %v615_v42, %v611_v39 }
 0x210   : > { %v624_v45 = vmul.f32 %v616_v44, %v2096_v58  ;;  %v350_v58 = vpop.f32.mrf.mxu0 }
 0x211   : > { %v1348_v0 = vadd.f32 -1.0, %v618_v62  ;;  %v351_v15 = vadd.f32 %v350_v58, %v2080_v40 }
 0x213   : > { %v620_v19 = vsel %vm443_vm5, %v1348_v0, %v601_v61  ;;  %v2193_v56 = vpop.f32.mrf.mxu1 }
 0x214   : > { %621 = vrot.lane.b32.xlu1 %v620_v19, %s1623_s15 }
 0x218   : > { %v2191_v54 = vpop.f32.mrf.mxu0 }
 0x21b   : > { %v2197_v59 = vpop.f32.mrf.mxu1 }
 0x21c   : > { %626 = vrot.lane.b32.xlu1 %v616_v44, %s1623_s15 }
 0x220   : > { %v2195_v55 = vpop.f32.mrf.mxu0 }
 0x26f   : > { %v2199_v57 = vpop.f32.mrf.mxu0  ;;  %v2201_v60 = vpop.f32.mrf.mxu1 }
 0x283   : > { %v2203_v61 = vpop.f32.mrf.mxu0  ;;  %v2205_v62 = vpop.f32.mrf.mxu1 }
 0x286   : > { %v622_v47 = vpop.permute.xlu1 %621 }
 0x287   : > { %v623_v49 = vmul.f32 %v622_v47, %v620_v19  ;;  %v392_v19 = vadd.f32 %v391_v53, %v2082_v41 }
 0x289   : > { %v2156_v48 = vadd.f32 %v624_v45, %v623_v49 }
 0x28b   : > { %1463 = vtanh.f32 %v2156_v48  ;;  %v2207_v63 = vpop.f32.mrf.mxu0  ;;  %v2209_v0 = vpop.f32.mrf.mxu1 }
 0x28c   : > { %2409 = vst [vmem:[#allocation7_spill] sm:$0xff] %v2209_v0 }
 0x28e   : > { %v627_v51 = vpop.permute.xlu1 %626 }
 0x291   : > { %v1464_v50 = vpop.eup %1463 }
 0x292   : > { %v629_v52 = vmul.f32 %v1464_v50, %v627_v51 }
 0x294   : > { %646 = vmatmul.f32.vlgmr.msrb.gmra.mxu0 %v629_v52  ;;  %666 = vmatmul.f32.vlgmr.msrb.gmra.mxu1 %v629_v52 }
 0x295   : > { %998 = vmatpush.msrb.mxu0 %v1745_v1  ;;  %1018 = vmatpush.msrb.mxu1 %v1755_v3 }
 0x297   : > { %999 = vmatpush.msrb.mxu0 %v1750_v2  ;;  %1019 = vmatpush.msrb.mxu1 %v1762_v4 }
 0x299   : > { %1000 = vmatpush.msrb.mxu0 %v1767_v5  ;;  %1020 = vmatpush.msrb.mxu1 %v1772_v6 }
 0x29b   : > { %1001 = vmatpush.msrb.mxu0 %v1779_v7  ;;  %1021 = vmatpush.msrb.mxu1 %v1784_v8 }
 0x29d   : > { %1002 = vmatpush.msrb.mxu0 %v1791_v9  ;;  %1022 = vmatpush.msrb.mxu1 %v1796_v10 }
 0x29f   : > { %1003 = vmatpush.msrb.mxu0 %v1803_v11  ;;  %1023 = vmatpush.msrb.mxu1 %v1808_v12 }
 0x2a1   : > { %1004 = vmatpush.msrb.mxu0 %v1815_v13  ;;  %1024 = vmatpush.msrb.mxu1 %v1820_v14 }
 0x2a3   : > { %1005 = vmatpush.msrb.mxu0 %v1833_v17  ;;  %1025 = vmatpush.msrb.mxu1 %v1838_v18 }
 0x2a5   : > { %1006 = vmatpush.msrb.mxu0 %v1852_v22  ;;  %1026 = vmatpush.msrb.mxu1 %v1857_v23 }
 0x2a7   : > { %1007 = vmatpush.msrb.mxu0 %v1864_v24  ;;  %1027 = vmatpush.msrb.mxu1 %v1869_v25 }
 0x2a9   : > { %1008 = vmatpush.msrb.mxu0 %v1877_v26  ;;  %1028 = vmatpush.msrb.mxu1 %v1882_v27 }
 0x2ab   : > { %1009 = vmatpush.msrb.mxu0 %v1891_v28  ;;  %1029 = vmatpush.msrb.mxu1 %v1896_v29 }
 0x2ad   : > { %1010 = vmatpush.msrb.mxu0 %v1905_v30  ;;  %1030 = vmatpush.msrb.mxu1 %v1910_v31 }
 0x2af   : > { %1011 = vmatpush.msrb.mxu0 %v1919_v32  ;;  %1031 = vmatpush.msrb.mxu1 %v1924_v33 }
 0x2b1   : > { %1012 = vmatpush.msrb.mxu0 %v1933_v34  ;;  %1032 = vmatpush.msrb.mxu1 %v1938_v35 }
 0x2b3   : > { %1013 = vmatpush.msrb.mxu0 %v1947_v36  ;;  %1033 = vmatpush.msrb.mxu1 %v1952_v37 }
 0x311   : > { %v647_v20 = vpop.f32.mrf.mxu0  ;;  %v667_v21 = vpop.f32.mrf.mxu1 }
 0x312   : > { %v670_v38 = vadd.f32 %v647_v20, %v351_v15  ;;  %v671_v39 = vadd.f32 %v667_v21, %v392_v19 }
 0x314   : > { %v1349_v42 = vmul.f32 -1.442695, %v670_v38  ;;  %v1350_v43 = vmul.f32 -1.442695, %v671_v39 }
 0x316   : > { %1465 = vpow2.f32 %v1349_v42 }
 0x317   : > { %1467 = vpow2.f32 %v1350_v43 }
 0x31c   : > { %v1466_v44 = vpop.eup %1465 }
 0x31d   : > { %v1468_v46 = vpop.eup %1467  ;;  %v678_v47 = vadd.f32 1.0, %v1466_v44 }
 0x31e   : > { %v679_v45 = vadd.f32 1.0, %v1468_v46 }
 0x31f   : > { %1469 = vrcp.f32 %v678_v47  ;;  %v691_v58 = vand.u32 2147483648, %v678_v47  ;;  %v689_v15 = vand.u32 2147483647, %v678_v47  ;;  %vm685_vm4 = vweird.f32 %v678_v47 }
 0x320   : > { %1471 = vrcp.f32 %v679_v45  ;;  %vm700_vm9 = vweird.f32 %v679_v45 }
 0x321   : > { %v692_v20 = vor.u32 1.1754944e-38, %v691_v58  ;;  %vm690_vm7 = vcmp.eq.f32.partialorder %v689_v15, 8.507059e+37 }
 0x325   : > { %v1470_v49 = vpop.eup %1469 }
 0x326   : > { %v1472_v50 = vpop.eup %1471  ;;  %v681_v51 = vmul.f32 %v1470_v49, %v678_v47  ;;  %vm686_vm3 = vweird.f32 %v1470_v49 }
 0x327   : > { %v696_v53 = vmul.f32 %v1472_v50, %v679_v45  ;;  %vm687_vm6 = vmor %vm685_vm4, %vm686_vm3  ;;  %vm701_vm8 = vweird.f32 %v1472_v50 }
 0x328   : > { %v682_v52 = vsub.f32 1.0, %v681_v51  ;;  %vm702_vm10 = vmor %vm700_vm9, %vm701_vm8 }
 0x329   : > { %v697_v21 = vsub.f32 1.0, %v696_v53 }
 0x32a   : > { %v683_v0 = vmul.f32 %v1470_v49, %v682_v52  ;;  %v706_v52 = vand.u32 2147483648, %v679_v45 }
 0x32b   : > { %v698_v43 = vmul.f32 %v1472_v50, %v697_v21 }
 0x32c   : > { %v684_v19 = vadd.f32 %v1470_v49, %v683_v0  ;;  %v704_v0 = vand.u32 2147483647, %v679_v45  ;;  %v707_v58 = vor.u32 1.1754944e-38, %v706_v52  ;;  %v357_v52 = vadd.f32 %v2195_v55, %v2080_v40 }
 0x32d   : > { %v699_v51 = vadd.f32 %v1472_v50, %v698_v43 }
 0x32e   : > { %v688_v38 = vsel %vm687_vm6, %v1470_v49, %v684_v19  ;;  %vm705_vm11 = vcmp.eq.f32.partialorder %v704_v0, 8.507059e+37  ;;  %v398_v0 = vadd.f32 %v2197_v59, %v2082_v41 }
 0x32f   : > { %v693_v39 = vsel %vm690_vm7, %v692_v20, %v688_v38  ;;  %v703_v47 = vsel %vm702_vm10, %v1472_v50, %v699_v51 }
 0x330   : > { %v710_v42 = vmul.f32 2.0, %v693_v39  ;;  %v708_v49 = vsel %vm705_vm11, %v707_v58, %v703_v47 }
 0x331   : > { %v716_v15 = vmul.f32 %v708_v49, %v2156_v48 }
 0x332   : > { %v1351_v44 = vadd.f32 -1.0, %v710_v42 }
 0x334   : > { %v712_v46 = vsel %vm443_vm5, %v1351_v44, %v693_v39 }
 0x335   : > { %713 = vrot.lane.b32.xlu2 %v712_v46, %s1623_s15 }
 0x33d   : > { %718 = vrot.lane.b32.xlu2 %v708_v49, %s1623_s15 }
 0x38f   : > { %v714_v53 = vpop.permute.xlu2 %713 }
 0x390   : > { %v715_v19 = vmul.f32 %v714_v53, %v712_v46 }
 0x392   : > { %v2218_v20 = vadd.f32 %v716_v15, %v715_v19 }
 0x394   : > { %1473 = vtanh.f32 %v2218_v20 }
 0x397   : > { %v719_v38 = vpop.permute.xlu2 %718 }
 0x39a   : > { %v1474_v21 = vpop.eup %1473 }
 0x39b   : > { %v721_v39 = vmul.f32 %v1474_v21, %v719_v38 }
 0x39d   : > { %738 = vmatmul.f32.vlgmr.msra.gmra.mxu2 %v721_v39  ;;  %758 = vmatmul.f32.vlgmr.msra.gmra.mxu3 %v721_v39 }
 0x39e   : > { %1090 = vmatpush.msra.mxu2 %v1745_v1  ;;  %1110 = vmatpush.msra.mxu3 %v1755_v3  ;;  %v354_v1 = vadd.f32 %v2191_v54, %v2080_v40 }
 0x3a0   : > { %1091 = vmatpush.msra.mxu2 %v1750_v2  ;;  %1111 = vmatpush.msra.mxu3 %v1762_v4  ;;  %v395_v2 = vadd.f32 %v2193_v56, %v2082_v41 }
 0x3a2   : > { %1092 = vmatpush.msra.mxu2 %v1767_v5  ;;  %1112 = vmatpush.msra.mxu3 %v1772_v6 }
 0x3a4   : > { %1093 = vmatpush.msra.mxu2 %v1779_v7  ;;  %1113 = vmatpush.msra.mxu3 %v1784_v8 }
 0x3a6   : > { %1094 = vmatpush.msra.mxu2 %v1791_v9  ;;  %1114 = vmatpush.msra.mxu3 %v1796_v10 }
 0x3a8   : > { %1095 = vmatpush.msra.mxu2 %v1803_v11  ;;  %1115 = vmatpush.msra.mxu3 %v1808_v12 }
 0x3aa   : > { %1096 = vmatpush.msra.mxu2 %v1815_v13  ;;  %1116 = vmatpush.msra.mxu3 %v1820_v14 }
 0x3ac   : > { %1097 = vmatpush.msra.mxu2 %v1833_v17  ;;  %1117 = vmatpush.msra.mxu3 %v1838_v18 }
 0x3ae   : > { %1098 = vmatpush.msra.mxu2 %v1852_v22  ;;  %1118 = vmatpush.msra.mxu3 %v1857_v23 }
 0x3b0   : > { %1099 = vmatpush.msra.mxu2 %v1864_v24  ;;  %1119 = vmatpush.msra.mxu3 %v1869_v25 }
 0x3b2   : > { %1100 = vmatpush.msra.mxu2 %v1877_v26  ;;  %1120 = vmatpush.msra.mxu3 %v1882_v27 }
 0x3b4   : > { %1101 = vmatpush.msra.mxu2 %v1891_v28  ;;  %1121 = vmatpush.msra.mxu3 %v1896_v29 }
 0x3b6   : > { %1102 = vmatpush.msra.mxu2 %v1905_v30  ;;  %1122 = vmatpush.msra.mxu3 %v1910_v31 }
 0x3b8   : > { %1103 = vmatpush.msra.mxu2 %v1919_v32  ;;  %1123 = vmatpush.msra.mxu3 %v1924_v33 }
 0x3ba   : > { %1104 = vmatpush.msra.mxu2 %v1933_v34  ;;  %1124 = vmatpush.msra.mxu3 %v1938_v35 }
 0x3bc   : > { %1105 = vmatpush.msra.mxu2 %v1947_v36  ;;  %1125 = vmatpush.msra.mxu3 %v1952_v37 }
 0x420   : > { %v739_v3 = vpop.f32.mrf.mxu2  ;;  %v759_v4 = vpop.f32.mrf.mxu3 }
 0x421   : > { %v762_v5 = vadd.f32 %v739_v3, %v354_v1  ;;  %v763_v6 = vadd.f32 %v759_v4, %v395_v2 }
 0x423   : > { %v1352_v7 = vmul.f32 -1.442695, %v762_v5  ;;  %v1353_v8 = vmul.f32 -1.442695, %v763_v6 }
 0x425   : > { %1475 = vpow2.f32 %v1352_v7 }
 0x426   : > { %1477 = vpow2.f32 %v1353_v8 }
 0x42b   : > { %v1476_v9 = vpop.eup %1475 }
 0x42c   : > { %v1478_v10 = vpop.eup %1477  ;;  %v770_v11 = vadd.f32 1.0, %v1476_v9 }
 0x42d   : > { %v771_v12 = vadd.f32 1.0, %v1478_v10 }
 0x42e   : > { %1479 = vrcp.f32 %v770_v11  ;;  %v783_v24 = vand.u32 2147483648, %v770_v11  ;;  %v781_v27 = vand.u32 2147483647, %v770_v11  ;;  %vm777_vm14 = vweird.f32 %v770_v11 }
 0x42f   : > { %1481 = vrcp.f32 %v771_v12  ;;  %v798_v25 = vand.u32 2147483648, %v771_v12  ;;  %v796_v29 = vand.u32 2147483647, %v771_v12  ;;  %vm792_vm15 = vweird.f32 %v771_v12 }
 0x430   : > { %v784_v32 = vor.u32 1.1754944e-38, %v783_v24  ;;  %vm782_vm3 = vcmp.eq.f32.partialorder %v781_v27, 8.507059e+37 }
 0x431   : > { %v799_v33 = vor.u32 1.1754944e-38, %v798_v25  ;;  %vm797_vm4 = vcmp.eq.f32.partialorder %v796_v29, 8.507059e+37 }
 0x434   : > { %v1480_v13 = vpop.eup %1479 }
 0x435   : > { %v1482_v14 = vpop.eup %1481  ;;  %v773_v17 = vmul.f32 %v1480_v13, %v770_v11  ;;  %vm778_vm12 = vweird.f32 %v1480_v13 }
 0x436   : > { %v788_v18 = vmul.f32 %v1482_v14, %v771_v12  ;;  %vm793_vm13 = vweird.f32 %v1482_v14  ;;  %vm779_vm1 = vmor %vm777_vm14, %vm778_vm12 }
 0x437   : > { %v774_v22 = vsub.f32 1.0, %v773_v17  ;;  %vm794_vm2 = vmor %vm792_vm15, %vm793_vm13 }
 0x438   : > { %v789_v23 = vsub.f32 1.0, %v788_v18 }
 0x439   : > { %v775_v26 = vmul.f32 %v1480_v13, %v774_v22 }
 0x43a   : > { %v790_v28 = vmul.f32 %v1482_v14, %v789_v23 }
 0x43b   : > { %v776_v30 = vadd.f32 %v1480_v13, %v775_v26 }
 0x43c   : > { %v791_v31 = vadd.f32 %v1482_v14, %v790_v28 }
 0x43d   : > { %v780_v34 = vsel %vm779_vm1, %v1480_v13, %v776_v30 }
 0x43e   : > { %v795_v35 = vsel %vm794_vm2, %v1482_v14, %v791_v31  ;;  %v785_v36 = vsel %vm782_vm3, %v784_v32, %v780_v34  ;;  %v360_v34 = vadd.f32 %v2199_v57, %v2080_v40 }
 0x43f   : > { %v800_v37 = vsel %vm797_vm4, %v799_v33, %v795_v35  ;;  %v802_v48 = vmul.f32 2.0, %v785_v36  ;;  %v401_v35 = vadd.f32 %v2201_v60, %v2082_v41 }
 0x440   : > { %810 = vrot.lane.b32.xlu1 %v800_v37, %s1623_s15  ;;  %v808_v50 = vmul.f32 %v800_v37, %v2218_v20 }
 0x441   : > { %v1354_v54 = vadd.f32 -1.0, %v802_v48 }
 0x443   : > { %v804_v56 = vsel %vm443_vm5, %v1354_v54, %v785_v36 }
 0x444   : > { %805 = vrot.lane.b32.xlu0 %v804_v56, %s1623_s15 }
 0x4b2   : > { %v811_v46 = vpop.permute.xlu1 %810 }
 0x4b6   : > { %v806_v45 = vpop.permute.xlu0 %805 }
 0x4b7   : > { %v807_v42 = vmul.f32 %v806_v45, %v804_v56 }
 0x4b9   : > { %v809_v43 = vadd.f32 %v808_v50, %v807_v42 }
 0x4bb   : > { %1483 = vtanh.f32 %v809_v43 }
 0x4c1   : > { %v1484_v44 = vpop.eup %1483 }
 0x4c2   : > { %v813_v51 = vmul.f32 %v1484_v44, %v811_v46 }
 0x4c4   : > { %830 = vmatmul.f32.vlgmr.msra.gmra.mxu0 %v813_v51  ;;  %850 = vmatmul.f32.vlgmr.msra.gmra.mxu1 %v813_v51 }
 0x541   : > { %v831_v47 = vpop.f32.mrf.mxu0  ;;  %v851_v58 = vpop.f32.mrf.mxu1 }
 0x542   : > { %v854_v49 = vadd.f32 %v831_v47, %v357_v52  ;;  %v855_v53 = vadd.f32 %v851_v58, %v398_v0 }
 0x544   : > { %v1355_v15 = vmul.f32 -1.442695, %v854_v49  ;;  %v1356_v19 = vmul.f32 -1.442695, %v855_v53 }
 0x546   : > { %1485 = vpow2.f32 %v1355_v15 }
 0x547   : > { %1487 = vpow2.f32 %v1356_v19 }
 0x54c   : > { %v1486_v20 = vpop.eup %1485 }
 0x54d   : > { %v1488_v21 = vpop.eup %1487  ;;  %v862_v38 = vadd.f32 1.0, %v1486_v20 }
 0x54e   : > { %v863_v39 = vadd.f32 1.0, %v1488_v21 }
 0x54f   : > { %1489 = vrcp.f32 %v862_v38  ;;  %v875_v5 = vand.u32 2147483648, %v862_v38  ;;  %v873_v8 = vand.u32 2147483647, %v862_v38  ;;  %vm869_vm8 = vweird.f32 %v862_v38 }
 0x550   : > { %1491 = vrcp.f32 %v863_v39  ;;  %v890_v6 = vand.u32 2147483648, %v863_v39  ;;  %v888_v10 = vand.u32 2147483647, %v863_v39  ;;  %vm884_vm9 = vweird.f32 %v863_v39 }
 0x551   : > { %v876_v13 = vor.u32 1.1754944e-38, %v875_v5  ;;  %vm874_vm12 = vcmp.eq.f32.partialorder %v873_v8, 8.507059e+37 }
 0x552   : > { %v891_v14 = vor.u32 1.1754944e-38, %v890_v6  ;;  %vm889_vm13 = vcmp.eq.f32.partialorder %v888_v10, 8.507059e+37 }
 0x555   : > { %v1490_v1 = vpop.eup %1489 }
 0x556   : > { %v1492_v2 = vpop.eup %1491  ;;  %v865_v55 = vmul.f32 %v1490_v1, %v862_v38  ;;  %vm870_vm6 = vweird.f32 %v1490_v1 }
 0x557   : > { %v880_v3 = vmul.f32 %v1492_v2, %v863_v39  ;;  %vm885_vm7 = vweird.f32 %v1492_v2  ;;  %vm871_vm10 = vmor %vm869_vm8, %vm870_vm6 }
 0x558   : > { %v866_v4 = vsub.f32 1.0, %v865_v55  ;;  %vm886_vm11 = vmor %vm884_vm9, %vm885_vm7 }
 0x559   : > { %v881_v59 = vsub.f32 1.0, %v880_v3 }
 0x55a   : > { %v867_v7 = vmul.f32 %v1490_v1, %v866_v4 }
 0x55b   : > { %v882_v9 = vmul.f32 %v1492_v2, %v881_v59 }
 0x55c   : > { %v868_v11 = vadd.f32 %v1490_v1, %v867_v7 }
 0x55d   : > { %v883_v12 = vadd.f32 %v1492_v2, %v882_v9 }
 0x55e   : > { %v872_v17 = vsel %vm871_vm10, %v1490_v1, %v868_v11 }
 0x55f   : > { %v887_v18 = vsel %vm886_vm11, %v1492_v2, %v883_v12  ;;  %v877_v22 = vsel %vm874_vm12, %v876_v13, %v872_v17  ;;  %v363_v13 = vadd.f32 %v2203_v61, %v2080_v40 }
 0x560   : > { %v892_v23 = vsel %vm889_vm13, %v891_v14, %v887_v18  ;;  %v894_v24 = vmul.f32 2.0, %v877_v22  ;;  %v404_v14 = vadd.f32 %v2205_v62, %v2082_v41 }
 0x561   : > { %902 = vrot.lane.b32.xlu0 %v892_v23, %s1623_s15  ;;  %v900_v29 = vmul.f32 %v892_v23, %v809_v43 }
 0x562   : > { %v1357_v25 = vadd.f32 -1.0, %v894_v24 }
 0x564   : > { %v896_v26 = vsel %vm443_vm5, %v1357_v25, %v877_v22 }
 0x565   : > { %897 = vrot.lane.b32.xlu2 %v896_v26, %s1623_s15 }
 0x5bf   : > { %v898_v27 = vpop.permute.xlu2 %897 }
 0x5c0   : > { %v899_v28 = vmul.f32 %v898_v27, %v896_v26 }
 0x5c2   : > { %v901_v30 = vadd.f32 %v900_v29, %v899_v28 }
 0x5c4   : > { %1493 = vtanh.f32 %v901_v30 }
 0x5ca   : > { %v1494_v31 = vpop.eup %1493 }
 0x5d3   : > { %v903_v32 = vpop.permute.xlu0 %902 }
 0x5d4   : > { %v905_v33 = vmul.f32 %v1494_v31, %v903_v32 }
 0x5d6   : > { %922 = vmatmul.f32.vlgmr.msrb.gmra.mxu2 %v905_v33  ;;  %942 = vmatmul.f32.vlgmr.msrb.gmra.mxu3 %v905_v33 }
 0x659   : > { %v923_v36 = vpop.f32.mrf.mxu2  ;;  %v943_v37 = vpop.f32.mrf.mxu3 }
 0x65a   : > { %v946_v48 = vadd.f32 %v923_v36, %v360_v34  ;;  %v947_v54 = vadd.f32 %v943_v37, %v401_v35 }
 0x65c   : > { %v1358_v56 = vmul.f32 -1.442695, %v946_v48  ;;  %v1359_v45 = vmul.f32 -1.442695, %v947_v54 }
 0x65e   : > { %1495 = vpow2.f32 %v1358_v56 }
 0x65f   : > { %1497 = vpow2.f32 %v1359_v45 }
 0x664   : > { %v1496_v50 = vpop.eup %1495 }
 0x665   : > { %v1498_v42 = vpop.eup %1497  ;;  %v954_v43 = vadd.f32 1.0, %v1496_v50 }
 0x666   : > { %v955_v44 = vadd.f32 1.0, %v1498_v42 }
 0x667   : > { %1499 = vrcp.f32 %v954_v43  ;;  %v967_v47 = vand.u32 2147483648, %v954_v43  ;;  %v965_v53 = vand.u32 2147483647, %v954_v43  ;;  %vm961_vm1 = vweird.f32 %v954_v43 }
 0x668   : > { %1501 = vrcp.f32 %v955_v44  ;;  %v982_v58 = vand.u32 2147483648, %v955_v44  ;;  %v980_v19 = vand.u32 2147483647, %v955_v44  ;;  %vm976_vm2 = vweird.f32 %v955_v44 }
 0x669   : > { %v968_v38 = vor.u32 1.1754944e-38, %v967_v47  ;;  %vm966_vm6 = vcmp.eq.f32.partialorder %v965_v53, 8.507059e+37 }
 0x66a   : > { %v983_v39 = vor.u32 1.1754944e-38, %v982_v58  ;;  %vm981_vm7 = vcmp.eq.f32.partialorder %v980_v19, 8.507059e+37 }
 0x66d   : > { %v1500_v46 = vpop.eup %1499 }
 0x66e   : > { %v1502_v51 = vpop.eup %1501  ;;  %v957_v57 = vmul.f32 %v1500_v46, %v954_v43  ;;  %vm962_vm14 = vweird.f32 %v1500_v46 }
 0x66f   : > { %v972_v52 = vmul.f32 %v1502_v51, %v955_v44  ;;  %vm977_vm15 = vweird.f32 %v1502_v51  ;;  %vm963_vm3 = vmor %vm961_vm1, %vm962_vm14 }
 0x670   : > { %v958_v0 = vsub.f32 1.0, %v957_v57  ;;  %vm978_vm4 = vmor %vm976_vm2, %vm977_vm15 }
 0x671   : > { %v973_v60 = vsub.f32 1.0, %v972_v52 }
 0x672   : > { %v959_v49 = vmul.f32 %v1500_v46, %v958_v0 }
 0x673   : > { %v974_v15 = vmul.f32 %v1502_v51, %v973_v60 }
 0x674   : > { %v960_v20 = vadd.f32 %v1500_v46, %v959_v49 }
 0x675   : > { %v975_v21 = vadd.f32 %v1502_v51, %v974_v15 }
 0x676   : > { %v964_v1 = vsel %vm963_vm3, %v1500_v46, %v960_v20  ;;  %v366_v20 = vadd.f32 %v2207_v63, %v2080_v40 }
 0x677   : > { %v979_v2 = vsel %vm978_vm4, %v1502_v51, %v975_v21  ;;  %v969_v55 = vsel %vm966_vm6, %v968_v38, %v964_v1  ;;  %v2410_v21 = vld [vmem:[#allocation7_spill] sm:$0xff] }
 0x678   : > { %v984_v3 = vsel %vm981_vm7, %v983_v39, %v979_v2  ;;  %v986_v4 = vmul.f32 2.0, %v969_v55  ;;  %v407_v38 = vadd.f32 %v2410_v21, %v2082_v41 }
 0x679   : > { %994 = vrot.lane.b32.xlu2 %v984_v3, %s1623_s15  ;;  %v992_v7 = vmul.f32 %v984_v3, %v901_v30 }
 0x67a   : > { %v1360_v59 = vadd.f32 -1.0, %v986_v4 }
 0x67c   : > { %v988_v5 = vsel %vm443_vm5, %v1360_v59, %v969_v55 }
 0x67d   : > { %989 = vrot.lane.b32.xlu1 %v988_v5, %s1623_s15 }
 0x6d3   : > { %v995_v11 = vpop.permute.xlu2 %994 }
 0x6ef   : > { %v990_v6 = vpop.permute.xlu1 %989 }
 0x6f0   : > { %v991_v8 = vmul.f32 %v990_v6, %v988_v5 }
 0x6f2   : > { %v993_v9 = vadd.f32 %v992_v7, %v991_v8 }
 0x6f4   : > { %1503 = vtanh.f32 %v993_v9 }
 0x6fa   : > { %v1504_v10 = vpop.eup %1503 }
 0x6fb   : > { %v997_v12 = vmul.f32 %v1504_v10, %v995_v11 }
 0x6fd   : > { %1014 = vmatmul.f32.vlgmr.msrb.gmra.mxu0 %v997_v12  ;;  %1034 = vmatmul.f32.vlgmr.msrb.gmra.mxu1 %v997_v12 }
 0x77a   : > { %v1015_v17 = vpop.f32.mrf.mxu0  ;;  %v1035_v18 = vpop.f32.mrf.mxu1 }
 0x77b   : > { %v1038_v22 = vadd.f32 %v1015_v17, %v363_v13  ;;  %v1039_v23 = vadd.f32 %v1035_v18, %v404_v14 }
 0x77d   : > { %v1361_v24 = vmul.f32 -1.442695, %v1038_v22  ;;  %v1362_v25 = vmul.f32 -1.442695, %v1039_v23 }
 0x77f   : > { %1505 = vpow2.f32 %v1361_v24 }
 0x780   : > { %1507 = vpow2.f32 %v1362_v25 }
 0x785   : > { %v1506_v26 = vpop.eup %1505 }
 0x786   : > { %v1508_v27 = vpop.eup %1507  ;;  %v1046_v28 = vadd.f32 1.0, %v1506_v26 }
 0x787   : > { %v1047_v29 = vadd.f32 1.0, %v1508_v27 }
 0x788   : > { %1509 = vrcp.f32 %v1046_v28  ;;  %v1059_v34 = vand.u32 2147483648, %v1046_v28  ;;  %v1057_v37 = vand.u32 2147483647, %v1046_v28  ;;  %vm1053_vm10 = vweird.f32 %v1046_v28 }
 0x789   : > { %1511 = vrcp.f32 %v1047_v29  ;;  %v1074_v35 = vand.u32 2147483648, %v1047_v29  ;;  %v1072_v54 = vand.u32 2147483647, %v1047_v29  ;;  %vm1068_vm11 = vweird.f32 %v1047_v29 }
 0x78a   : > { %v1060_v50 = vor.u32 1.1754944e-38, %v1059_v34  ;;  %vm1058_vm14 = vcmp.eq.f32.partialorder %v1057_v37, 8.507059e+37 }
 0x78b   : > { %v1075_v42 = vor.u32 1.1754944e-38, %v1074_v35  ;;  %vm1073_vm15 = vcmp.eq.f32.partialorder %v1072_v54, 8.507059e+37 }
 0x78e   : > { %v1510_v30 = vpop.eup %1509 }
 0x78f   : > { %v1512_v31 = vpop.eup %1511  ;;  %v1049_v61 = vmul.f32 %v1510_v30, %v1046_v28  ;;  %vm1054_vm8 = vweird.f32 %v1510_v30 }
 0x790   : > { %v1064_v32 = vmul.f32 %v1512_v31, %v1047_v29  ;;  %vm1069_vm9 = vweird.f32 %v1512_v31  ;;  %vm1055_vm12 = vmor %vm1053_vm10, %vm1054_vm8 }
 0x791   : > { %v1050_v33 = vsub.f32 1.0, %v1049_v61  ;;  %vm1070_vm13 = vmor %vm1068_vm11, %vm1069_vm9 }
 0x792   : > { %v1065_v62 = vsub.f32 1.0, %v1064_v32 }
 0x793   : > { %v1051_v36 = vmul.f32 %v1510_v30, %v1050_v33 }
 0x794   : > { %v1066_v48 = vmul.f32 %v1512_v31, %v1065_v62 }
 0x795   : > { %v1052_v56 = vadd.f32 %v1510_v30, %v1051_v36 }
 0x796   : > { %v1067_v45 = vadd.f32 %v1512_v31, %v1066_v48 }
 0x797   : > { %v1056_v43 = vsel %vm1055_vm12, %v1510_v30, %v1052_v56 }
 0x798   : > { %v1071_v44 = vsel %vm1070_vm13, %v1512_v31, %v1067_v45  ;;  %v1061_v46 = vsel %vm1058_vm14, %v1060_v50, %v1056_v43 }
 0x799   : > { %v1076_v51 = vsel %vm1073_vm15, %v1075_v42, %v1071_v44  ;;  %v1078_v57 = vmul.f32 2.0, %v1061_v46 }
 0x79a   : > { %1086 = vrot.lane.b32.xlu1 %v1076_v51, %s1623_s15  ;;  %v1084_v47 = vmul.f32 %v1076_v51, %v993_v9 }
 0x79b   : > { %v1363_v52 = vadd.f32 -1.0, %v1078_v57 }
 0x79d   : > { %v1080_v0 = vsel %vm443_vm5, %v1363_v52, %v1061_v46 }
 0x79e   : > { %1081 = vrot.lane.b32.xlu0 %v1080_v0, %s1623_s15 }
 0x80c   : > { %v1087_v15 = vpop.permute.xlu1 %1086 }
 0x810   : > { %v1082_v60 = vpop.permute.xlu0 %1081 }
 0x811   : > { %v1083_v58 = vmul.f32 %v1082_v60, %v1080_v0 }
 0x813   : > { %v1085_v49 = vadd.f32 %v1084_v47, %v1083_v58 }
 0x815   : > { %1513 = vtanh.f32 %v1085_v49 }
 0x81b   : > { %v1514_v53 = vpop.eup %1513 }
 0x81c   : > { %v1089_v19 = vmul.f32 %v1514_v53, %v1087_v15 }
 0x81e   : > { %1106 = vmatmul.f32.vlgmr.msra.gmra.mxu2 %v1089_v19  ;;  %1126 = vmatmul.f32.vlgmr.msra.gmra.mxu3 %v1089_v19 }
 0x8a1   : > { %v1107_v39 = vpop.f32.mrf.mxu2  ;;  %v1127_v1 = vpop.f32.mrf.mxu3 }
 0x8a2   : > { %v1130_v2 = vadd.f32 %v1107_v39, %v366_v20  ;;  %v1131_v55 = vadd.f32 %v1127_v1, %v407_v38 }
 0x8a4   : > { %v1364_v3 = vmul.f32 -1.442695, %v1130_v2  ;;  %v1365_v4 = vmul.f32 -1.442695, %v1131_v55 }
 0x8a6   : > { %1515 = vpow2.f32 %v1364_v3 }
 0x8a7   : > { %1517 = vpow2.f32 %v1365_v4 }
 0x8ac   : > { %v1516_v59 = vpop.eup %1515 }
 0x8ad   : > { %v1518_v5 = vpop.eup %1517  ;;  %v1138_v6 = vadd.f32 1.0, %v1516_v59 }
 0x8ae   : > { %v1139_v7 = vadd.f32 1.0, %v1518_v5 }
 0x8af   : > { %1519 = vrcp.f32 %v1138_v6  ;;  %v1151_v11 = vand.u32 2147483648, %v1138_v6  ;;  %v1149_v14 = vand.u32 2147483647, %v1138_v6  ;;  %vm1145_vm3 = vweird.f32 %v1138_v6 }
 0x8b0   : > { %1521 = vrcp.f32 %v1139_v7  ;;  %v1166_v12 = vand.u32 2147483648, %v1139_v7  ;;  %v1164_v18 = vand.u32 2147483647, %v1139_v7  ;;  %vm1160_vm4 = vweird.f32 %v1139_v7 }
 0x8b1   : > { %v1152_v24 = vor.u32 1.1754944e-38, %v1151_v11  ;;  %vm1150_vm8 = vcmp.eq.f32.partialorder %v1149_v14, 8.507059e+37 }
 0x8b2   : > { %v1167_v25 = vor.u32 1.1754944e-38, %v1166_v12  ;;  %vm1165_vm9 = vcmp.eq.f32.partialorder %v1164_v18, 8.507059e+37 }
 0x8b5   : > { %v1520_v8 = vpop.eup %1519 }
 0x8b6   : > { %v1522_v9 = vpop.eup %1521  ;;  %v1141_v40 = vmul.f32 %v1520_v8, %v1138_v6  ;;  %vm1146_vm1 = vweird.f32 %v1520_v8 }
 0x8b7   : > { %v1156_v63 = vmul.f32 %v1522_v9, %v1139_v7  ;;  %vm1161_vm2 = vweird.f32 %v1522_v9  ;;  %vm1147_vm6 = vmor %vm1145_vm3, %vm1146_vm1 }
 0x8b8   : > { %v1142_v10 = vsub.f32 1.0, %v1141_v40  ;;  %vm1162_vm7 = vmor %vm1160_vm4, %vm1161_vm2 }
 0x8b9   : > { %v1157_v41 = vsub.f32 1.0, %v1156_v63 }
 0x8ba   : > { %v1143_v13 = vmul.f32 %v1520_v8, %v1142_v10 }
 0x8bb   : > { %v1158_v17 = vmul.f32 %v1522_v9, %v1157_v41 }
 0x8bc   : > { %v1144_v22 = vadd.f32 %v1520_v8, %v1143_v13 }
 0x8bd   : > { %v1159_v23 = vadd.f32 %v1522_v9, %v1158_v17 }
 0x8be   : > { %v1148_v26 = vsel %vm1147_vm6, %v1520_v8, %v1144_v22 }
 0x8bf   : > { %v1163_v27 = vsel %vm1162_vm7, %v1522_v9, %v1159_v23  ;;  %v1153_v28 = vsel %vm1150_vm8, %v1152_v24, %v1148_v26 }
 0x8c0   : > { %v1168_v29 = vsel %vm1165_vm9, %v1167_v25, %v1163_v27  ;;  %v1170_v30 = vmul.f32 2.0, %v1153_v28 }
 0x8c1   : > { %1178 = vrot.lane.b32.xlu0 %v1168_v29, %s1623_s15  ;;  %v1176_v33 = vmul.f32 %v1168_v29, %v1085_v49 }
 0x8c2   : > { %v1366_v31 = vadd.f32 -1.0, %v1170_v30 }
 0x8c4   : > { %v1172_v61 = vsel %vm443_vm5, %v1366_v31, %v1153_v28 }
 0x8c5   : > { %1173 = vrot.lane.b32.xlu2 %v1172_v61, %s1623_s15 }
 0x91f   : > { %v1174_v32 = vpop.permute.xlu2 %1173 }
 0x920   : > { %v1175_v62 = vmul.f32 %v1174_v32, %v1172_v61 }
 0x922   : > { %v1177_v34 = vadd.f32 %v1176_v33, %v1175_v62 }
 0x924   : > { %1183 = vst [vmem:[#allocation3] sm:$0xff] %v1177_v34  ;;  %1523 = vtanh.f32 %v1177_v34 }
 0x92a   : > { %v1524_v35 = vpop.eup %1523 }
 0x932   : > { %1187 = sbr.rel (%p1367_p0) target bundleno = 2520 (0x9d8), region = 52 }
 0x933   : > { %v1179_v36 = vpop.permute.xlu0 %1178 }
 0x934   : > { %v1181_v37 = vmul.f32 %v1524_v35, %v1179_v36 }
 0x936   : > { %1182 = vst [vmem:[#allocation2] sm:$0xff] %v1181_v37 }
 0x937   : > { %v1203_v16 = vld [vmem:[%s2399_s4 + $0x78] sm:$0xff]  ;;  %v1202_v48 = vld [vmem:[%s2399_s4 + $0x70] sm:$0xff]  ;;  %v1201_v54 = vld [vmem:[%s2399_s4 + $0x68] sm:$0xff] }
 0x938   : > { %1208 = vmatpush.msra.mxu0 %v1203_v16  ;;  %v1200_v56 = vld [vmem:[%s2399_s4 + $0x60] sm:$0xff]  ;;  %v1199_v45 = vld [vmem:[%s2399_s4 + $0x58] sm:$0xff]  ;;  %v1198_v50 = vld [vmem:[%s2399_s4 + $0x50] sm:$0xff] }
 0x939   : > { %v1197_v42 = vld [vmem:[%s2399_s4 + $0x48] sm:$0xff]  ;;  %v1196_v43 = vld [vmem:[%s2399_s4 + $0x40] sm:$0xff]  ;;  %v1195_v44 = vld [vmem:[%s2399_s4 + $0x38] sm:$0xff] }
 0x93a   : > { %1209 = vmatpush.msra.mxu0 %v1202_v48  ;;  %v1194_v46 = vld [vmem:[%s2399_s4 + $0x30] sm:$0xff]  ;;  %v1193_v51 = vld [vmem:[%s2399_s4 + $0x28] sm:$0xff]  ;;  %v1192_v57 = vld [vmem:[%s2399_s4 + $0x20] sm:$0xff] }
 0x93b   : > { %v1191_v52 = vld [vmem:[%s2399_s4 + $0x18] sm:$0xff]  ;;  %v1190_v0 = vld [vmem:[%s2399_s4 + $0x10] sm:$0xff]  ;;  %v1189_v60 = vld [vmem:[%s2399_s4 + $0x8] sm:$0xff] }
 0x93c   : > { %1210 = vmatpush.msra.mxu0 %v1201_v54  ;;  %v1188_v47 = vld [vmem:[%s2399_s4] sm:$0xff] }
 0x93d   : > { %v1525_v58 = vld [vmem:[%s2400_s5] ss:$0 sm:$0xff] }
 0x93e   : > { %1211 = vmatpush.msra.mxu0 %v1200_v56 }
 0x940   : > { %1212 = vmatpush.msra.mxu0 %v1199_v45 }
 0x942   : > { %1213 = vmatpush.msra.mxu0 %v1198_v50 }
 0x944   : > { %1214 = vmatpush.msra.mxu0 %v1197_v42 }
 0x946   : > { %1215 = vmatpush.msra.mxu0 %v1196_v43 }
 0x948   : > { %1216 = vmatpush.msra.mxu0 %v1195_v44 }
 0x94a   : > { %1217 = vmatpush.msra.mxu0 %v1194_v46 }
 0x94c   : > { %1218 = vmatpush.msra.mxu0 %v1193_v51 }
 0x94e   : > { %1219 = vmatpush.msra.mxu0 %v1192_v57 }
 0x950   : > { %1220 = vmatpush.msra.mxu0 %v1191_v52 }
 0x952   : > { %1221 = vmatpush.msra.mxu0 %v1190_v0 }
 0x954   : > { %1222 = vmatpush.msra.mxu0 %v1189_v60 }
 0x956   : > { %1223 = vmatpush.msra.mxu0 %v1188_v47 }
 0x957   : > { %1224 = vmatmul.f32.vlgmr.msra.gmra.mxu0 %v1181_v37 }
 0x9d4   : > { %v1225_v49 = vpop.f32.mrf.mxu0 }
 0x9d5   : > { %v1226_v53 = vadd.f32 %v1525_v58, %v1225_v49 }
 0x9d7   : > { %1228 = vst.msk [vmem:[%s267_s11] sm:$0xff] %vm302_vm0, %v1226_v53 }
 0x9d8 PF: > { %s1369_s20 = sshll.u32 %s1608_s25, 3  ;;  %s1242_s24 = sshll.u32 %s267_s11, 4  ;;  %s1243_s24 = int_to_ptr.vmem [resolvable:$true] %s1242_s24 }
 0x9d9   : > { %s1240_s12 = scalar_lea.hbm %s2401_s6, %s1369_s20  ;;  %s2411_s30 = sand.u32 1, %s1596_s22  }
 0x9da   : > { %s1244_s15 = sshll.u32 %s1240_s12, 4  ;;  %s1230_s17 = scalar_lea.sflag [#allocation5], %s2411_s30  ;;  %s1245_s15 = int_to_ptr.hbm [resolvable:$true] %s1244_s15 }
 0x9db   : > { %s1540_s18 = sshra.s32 %s1245_s15, 4  ;;  %s1546_s1 = scalar_lea.hbm %s2401_s6, 16  ;;  %s1541_s18 = int_to_ptr.hbm [resolvable:$true] %s1540_s18 }
 0x9dc   : > { %s1542_s19 = scalar_lea.hbm %s1541_s18, 8  ;;  %p1547_p5 = scmp.lt.s32.totalorder %s1541_s18, %s2401_s6 }
 0x9dd   : > { %p1543_p1 = scmp.ne.s32.totalorder %s1541_s18, %s1542_s19  ;;  %p1548_p6 = scmp.lt.s32.totalorder %s1546_s1, %s1542_s19 }
 0x9df   : > { %p1544_p2 = pnand %p1543_p1, %p1708_p3  ;;  %p1549_p7 = por %p1548_p6, %p1547_p5 }
 0x9e1   : > { %p1545_p4 = pneg %p1544_p2 }
 0x9e3   : > { %p1550_p8 = pnand %p1549_p7, %p1545_p4 }
 0x9e5   : > { %1553 = shalt.err (!%p1550_p8)
}
 0x9e6   : > { %1372 = dma.vmem_to_hbm [thread:$0]  (%p1708_p3), %s1243_s24, 128, %s1245_s15, %s1230_s17  }
 0x9e7 PF: > { %p1378_p10 = scmp.ge.s32.totalorder %s1620_s28, 2  ;;  %s1256_s16 = sand.u32 1, %s1592_s21  }
 0x9e8   : > { %s1257_s0 = scalar_lea.sflag [#allocation5], %s1256_s16 }
 0x9e9   : > { %p1375_p11 = pnand %p1378_p10, %p1718_p9 }
 0x9eb   : > { %p1376_p12 = pneg %p1375_p11 }
 0x9ed   : > { %1587 = dma.done.wait (%p1376_p12), %s1257_s0, 128  }
 0x9ee   : > { %1589 = vsyncadd (%p1376_p12), %s1257_s0, 4294967168  ;;  %s19_s28 = sadd.s32 1, %s1620_s28   ;;  %s2412_s21 = smov %s1596_s22 }
 0x9ef   : > { %p16_p13 = scmp.ge.s32.totalorder %s19_s28, 6   ;;  %s2413_s22 = smov %s1600_s23 }
 0x9f0   : > { %s2414_s23 = smov %s1726_s13  ;;  %s2415_s24 = smov %s1612_s26 }
 0x9f1   : > { %s2416_s25 = smov %s1616_s27  ;;  %s2417_s26 = smov %s2420_s7 }
 0x9f2   : > { %s2418_s27 = smov %s2424_s8  ;;  %18 = sbr.rel (!%p16_p13) target bundleno = 8 (0x8), region = 87 }
 0x9f7   :  { %1263 = vsyncpa [#allocation5], 1 }
 0x9f8   :  { %1265 = vsyncpa [#allocation5 + $0x1], 1 }

</bundles_post_ra>
